<compile_context>
chip_gen: v6e
topology: v6e:2x2x1
jax: 0.10.0
libtpu: 0.0.40
codegen_flags: <defaults>
</compile_context>

<pallas_src>
import functools

import numpy as np
import jax
import jax.numpy as jnp
from jax.experimental import pallas as pl
from jax.experimental.pallas import tpu as pltpu  # noqa: F401  (TPU backend)


PARAMS = dict(
    bn=False,
    n_channels=4,
    input_shape=(16, 16),
    conv_filters=(8, 16),
    conv_sizes=(3, 3),
    conv_strides=(1, 1),
    pool_sizes=(2, 2),
    pool_strides=(2, 2),
    dropout=0.0,            # inference: nn.Dropout == identity
    avg_layer="identity",
    clf_neurons=(32, 10),
    clf_no_linear_fun="relu",
)


# -----------------------------------------------------------------------------
# Weight init (matches the layer structure of the PyTorch module).
# -----------------------------------------------------------------------------
def init_weights(key, p):
    wts = {"conv": [], "fc": []}
    n_keys = 2 * (len(p["conv_sizes"]) + len(p["clf_neurons"]))
    keys = list(jax.random.split(key, n_keys))
    ki = 0
    h, w = p["input_shape"]
    cin = p["n_channels"]
    for cs, cstr, psz, pstr, cout in zip(
        p["conv_sizes"], p["conv_strides"], p["pool_sizes"],
        p["pool_strides"], p["conv_filters"]
    ):
        fan_in = cs * cs * cin
        wk = jax.random.normal(keys[ki], (cs, cs, cin, cout), jnp.float32)
        wk = wk * (2.0 / fan_in) ** 0.5
        bk = 0.01 * jax.random.normal(keys[ki + 1], (cout,), jnp.float32)
        ki += 2
        wts["conv"].append((wk, bk, cstr, psz, pstr))
        h = ((h - cs) // cstr + 1 - psz) // pstr + 1
        w = ((w - cs) // cstr + 1 - psz) // pstr + 1
        cin = cout
    lin_in = cin * h * w  # flattened size in PyTorch NCHW order (avgpool=identity)
    for lout in p["clf_neurons"]:
        wk = jax.random.normal(keys[ki], (lin_in, lout), jnp.float32)
        wk = wk * (2.0 / lin_in) ** 0.5
        bk = 0.01 * jax.random.normal(keys[ki + 1], (lout,), jnp.float32)
        ki += 2
        wts["fc"].append((wk, bk))
        lin_in = lout
    return wts


# -----------------------------------------------------------------------------
# One-time (NumPy, init-time) construction of all constant kernel operands.
#
# Activation layout inside the kernel: 2-D slabs with rows = (n, h) and
# lanes = (w, c).  For each conv block:
#   rs[s]        : (N*Ho, N*Hi)   0/1 row-selection: picks input rows
#                                 (n, ho*pool_stride*conv_stride + s)
#   tg[di*P + b] : (Wi*Ci, Wo*Co) block-Toeplitz slice of the conv weights that
#                                 contracts (w_in, c_in) -> (w_out_pooled, c_out)
#                                 for kernel row di and pool column offset b
#   bexp         : (1, Wo*Co)     bias broadcast over pooled width
# pooled = ReLU(bexp + max_{a,b} sum_di (rs[a*cs+di] @ x) @ tg[di*P+b])
# The first Linear absorbs the NCHW torch.flatten via per-row slices V[hh].
# -----------------------------------------------------------------------------
def _build_plan(wts, params, batch):
    assert params["bn"] is False
    assert params["avg_layer"] == "identity"
    assert params["clf_no_linear_fun"] == "relu"

    n = batch
    h, w = params["input_shape"]
    cin = params["n_channels"]

    const = []
    conv_meta = []

    for (wk, bk, cs, pp, ps) in wts["conv"]:
        wk = np.asarray(wk, np.float32)          # (k, k, cin, cout)
        bk = np.asarray(bk, np.float32)
        k = wk.shape[0]
        cout = wk.shape[3]
        hc, wc = (h - k) // cs + 1, (w - k) // cs + 1       # conv output
        ho, wo = (hc - pp) // ps + 1, (wc - pp) // ps + 1   # pooled output
        n_s = (pp - 1) * cs + k                             # distinct row shifts

        rs = np.zeros((n_s, n * ho, n * h), np.float32)
        for s in range(n_s):
            for nn in range(n):
                for oh in range(ho):
                    col = oh * ps * cs + s
                    if col < h:
                        rs[s, nn * ho + oh, nn * h + col] = 1.0

        tg = np.zeros((k * pp, w * cin, wo * cout), np.float32)
        for di in range(k):
            for b in range(pp):
                for ow in range(wo):
                    for dj in range(k):
                        wi = (ow * ps + b) * cs + dj
                        tg[di * pp + b,
                           wi * cin:(wi + 1) * cin,
                           ow * cout:(ow + 1) * cout] = wk[di, dj]

        bexp = np.tile(bk[None, :], (1, wo))                # (1, wo*cout)

        const += [rs, tg, bexp]
        conv_meta.append((n_s, k, pp, cs))
        h, w, cin = ho, wo, cout

    # Classifier.  The first Linear absorbs torch.flatten(NCHW): feature index
    # f = c*(h*w) + hh*w + ww.
    fc = [(np.asarray(wk, np.float32), np.asarray(bk, np.float32))
          for (wk, bk) in wts["fc"]]
    w1, b1 = fc[0]
    out1 = w1.shape[1]
    rf = np.zeros((h, n, n * h), np.float32)
    v = np.zeros((h, w * cin, out1), np.float32)
    for hh in range(h):
        for nn in range(n):
            rf[hh, nn, nn * h + hh] = 1.0
        for ww in range(w):
            for c in range(cin):
                v[hh, ww * cin + c, :] = w1[c * h * w + hh * w + ww, :]
    const += [rf, v, b1[None, :]]

    for (wk, bk) in fc[1:]:
        const += [wk, bk[None, :]]

    meta = dict(conv=conv_meta, n_rows_fc=h, n_extra_fc=len(fc) - 1)
    return [jnp.asarray(c) for c in const], meta


# -----------------------------------------------------------------------------
# The single fused Pallas kernel (straight-line MXU/VPU code, no grid).
# -----------------------------------------------------------------------------
def _make_kernel(meta):
    conv_meta = meta["conv"]
    n_rows_fc = meta["n_rows_fc"]
    n_extra_fc = meta["n_extra_fc"]

    def kernel(*refs):
        out_ref = refs[-1]

        def dot(a, b):
            return jnp.dot(a, b, preferred_element_type=jnp.float32)

        x = refs[0][...]                         # (N*H, W*C) input slab
        i = 1

        # Conv2d -> ReLU -> MaxPool2d blocks; bias/ReLU/pool fused as epilogue.
        for (n_s, k, pp, cs) in conv_meta:
            rs_ref, tg_ref, b_ref = refs[i], refs[i + 1], refs[i + 2]
            i += 3
            shifted = [dot(rs_ref[s], x) for s in range(n_s)]
            pooled = None
            for a in range(pp):
                for b in range(pp):
                    acc = None
                    for di in range(k):
                        t = dot(shifted[a * cs + di], tg_ref[di * pp + b])
                        acc = t if acc is None else acc + t
                    pooled = acc if pooled is None else jnp.maximum(pooled, acc)
            x = jnp.maximum(pooled + b_ref[...], 0.0)

        # First Linear (absorbs the NCHW flatten), ReLU unless it is the last.
        rf_ref, v_ref, b_ref = refs[i], refs[i + 1], refs[i + 2]
        i += 3
        acc = None
        for hh in range(n_rows_fc):
            t = dot(dot(rf_ref[hh], x), v_ref[hh])
            acc = t if acc is None else acc + t
        x = acc + b_ref[...]
        if n_extra_fc > 0:
            x = jnp.maximum(x, 0.0)

        # Remaining Linear layers (ReLU on all but the last).
        for li in range(n_extra_fc):
            w_ref, bb_ref = refs[i], refs[i + 1]
            i += 2
            x = dot(x, w_ref[...]) + bb_ref[...]
            if li != n_extra_fc - 1:
                x = jnp.maximum(x, 0.0)

        # LogSoftmax(dim=1), fused into the same kernel.
        m = jnp.max(x, axis=-1, keepdims=True)
        lse = m + jnp.log(jnp.sum(jnp.exp(x - m), axis=-1, keepdims=True))
        out_ref[...] = (x - lse).astype(out_ref.dtype)

    return kernel


def convnet_forward(x_nchw, consts, meta):
    n, c, h, w = x_nchw.shape
    # Only per-forward wrapper work: NCHW -> (rows=(n,h), lanes=(w,c)) slab.
    x0 = jnp.transpose(x_nchw, (0, 2, 3, 1)).reshape(n * h, w * c)
    n_out = consts[-1].shape[-1]
    # No grid: one invocation; all operands are whole-array VMEM blocks
    # (default BlockSpec).  Total VMEM footprint ~0.2 MB.
    return pl.pallas_call(
        _make_kernel(meta),
        out_shape=jax.ShapeDtypeStruct((n, n_out), jnp.float32),
    )(x0, *consts)


# -----------------------------------------------------------------------------
# Pure-XLA reference (no Pallas) for numerics.
# -----------------------------------------------------------------------------
def _ref_forward(x_nchw, wts):
    x = jnp.transpose(x_nchw, (0, 2, 3, 1))
    for (wk, bk, cstr, psz, pstr) in wts["conv"]:
        y = jax.lax.conv_general_dilated(
            x, wk, window_strides=(cstr, cstr), padding="VALID",
            dimension_numbers=("NHWC", "HWIO", "NHWC"))
        y = jnp.maximum(y + bk, 0.0)
        y = jax.lax.reduce_window(
            y, -jnp.inf, jax.lax.max,
            (1, psz, psz, 1), (1, pstr, pstr, 1), "VALID")
        x = y
    x = jnp.transpose(x, (0, 3, 1, 2)).reshape(x.shape[0], -1)
    n_fc = len(wts["fc"])
    for li, (wk, bk) in enumerate(wts["fc"]):
        x = x @ wk + bk
        if li != n_fc - 1:
            x = jnp.maximum(x, 0.0)
    return jax.nn.log_softmax(x, axis=-1)


if __name__ == "__main__":
    key = jax.random.PRNGKey(0)
    k_x, k_w = jax.random.split(key)
    x = jax.random.normal(
        k_x, (2, PARAMS["n_channels"]) + PARAMS["input_shape"], dtype=jnp.float32
    )
    wts = init_weights(k_w, PARAMS)

    # One-time setup (NumPy): fold pooling / im2col / flatten into constants.
    consts, meta = _build_plan(wts, PARAMS, batch=x.shape[0])

    fwd = jax.jit(lambda xx, cc: convnet_forward(xx, cc, meta))
    y = fwd(x, consts)
    jax.block_until_ready(y)

    assert y.shape == (2, PARAMS["clf_neurons"][-1])
    assert bool(jnp.all(jnp.isfinite(y)))
    # log-softmax rows must exponentiate to probability distributions
    row_sums = jnp.sum(jnp.exp(y), axis=-1)
    assert bool(jnp.all(jnp.abs(row_sums - 1.0) < 1e-4))
    # numerics vs pure-XLA reference (2e-3 absolute: MXU default-precision
    # rounding differs slightly between the two op structures)
    y_ref = _ref_forward(x, wts)
    max_err = float(jnp.max(jnp.abs(y - y_ref)))
    assert max_err < 2e-3, max_err

    print("KERNEL_OK")
</pallas_src>

<mosaic_0001>
module attributes {stable_mosaic.version = 11 : i64} {
  func.func @kernel(%arg0: memref<32x64xf32, #tpu.memory_space<vmem>>, %arg1: memref<4x14x32xf32, #tpu.memory_space<vmem>>, %arg2: memref<6x64x56xf32, #tpu.memory_space<vmem>>, %arg3: memref<1x56xf32, #tpu.memory_space<vmem>>, %arg4: memref<4x4x14xf32, #tpu.memory_space<vmem>>, %arg5: memref<6x56x32xf32, #tpu.memory_space<vmem>>, %arg6: memref<1x32xf32, #tpu.memory_space<vmem>>, %arg7: memref<2x2x4xf32, #tpu.memory_space<vmem>>, %arg8: memref<2x32x32xf32, #tpu.memory_space<vmem>>, %arg9: memref<1x32xf32, #tpu.memory_space<vmem>>, %arg10: memref<32x10xf32, #tpu.memory_space<vmem>>, %arg11: memref<1x10xf32, #tpu.memory_space<vmem>>, %arg12: memref<2x10xf32, #tpu.memory_space<vmem>>) attributes {dimension_semantics = [], scalar_prefetch = 0 : i64, scratch_operands = 0 : i64, tpu.core_type = #tpu.core_type<tc>} {
    %c0 = arith.constant 0 : index
    %c0_0 = arith.constant 0 : index
    %0 = vector.load %arg0[%c0, %c0_0] : memref<32x64xf32, #tpu.memory_space<vmem>>, vector<32x64xf32>
    %c0_1 = arith.constant 0 : index
    %c0_2 = arith.constant 0 : index
    %c0_3 = arith.constant 0 : index
    %1 = vector.load %arg1[%c0_1, %c0_2, %c0_3] : memref<4x14x32xf32, #tpu.memory_space<vmem>>, vector<1x14x32xf32>
    %2 = vector.shape_cast %1 : vector<1x14x32xf32> to vector<14x32xf32>
    %cst = arith.constant dense<0.000000e+00> : vector<14x64xf32>
    %3 = tpu.matmul %2, %0, %cst {dimension_numbers = #tpu.dot_dimension_numbers<[1], [0], [0], [1], [0, 0, 1, 1], [], []>} : vector<14x32xf32>, vector<32x64xf32>, vector<14x64xf32> -> vector<14x64xf32>
    %c1 = arith.constant 1 : index
    %c0_4 = arith.constant 0 : index
    %c0_5 = arith.constant 0 : index
    %4 = vector.load %arg1[%c1, %c0_4, %c0_5] : memref<4x14x32xf32, #tpu.memory_space<vmem>>, vector<1x14x32xf32>
    %5 = vector.shape_cast %4 : vector<1x14x32xf32> to vector<14x32xf32>
    %cst_6 = arith.constant dense<0.000000e+00> : vector<14x64xf32>
    %6 = tpu.matmul %5, %0, %cst_6 {dimension_numbers = #tpu.dot_dimension_numbers<[1], [0], [0], [1], [0, 0, 1, 1], [], []>} : vector<14x32xf32>, vector<32x64xf32>, vector<14x64xf32> -> vector<14x64xf32>
    %c2 = arith.constant 2 : index
    %c0_7 = arith.constant 0 : index
    %c0_8 = arith.constant 0 : index
    %7 = vector.load %arg1[%c2, %c0_7, %c0_8] : memref<4x14x32xf32, #tpu.memory_space<vmem>>, vector<1x14x32xf32>
    %8 = vector.shape_cast %7 : vector<1x14x32xf32> to vector<14x32xf32>
    %cst_9 = arith.constant dense<0.000000e+00> : vector<14x64xf32>
    %9 = tpu.matmul %8, %0, %cst_9 {dimension_numbers = #tpu.dot_dimension_numbers<[1], [0], [0], [1], [0, 0, 1, 1], [], []>} : vector<14x32xf32>, vector<32x64xf32>, vector<14x64xf32> -> vector<14x64xf32>
    %c3 = arith.constant 3 : index
    %c0_10 = arith.constant 0 : index
    %c0_11 = arith.constant 0 : index
    %10 = vector.load %arg1[%c3, %c0_10, %c0_11] : memref<4x14x32xf32, #tpu.memory_space<vmem>>, vector<1x14x32xf32>
    %11 = vector.shape_cast %10 : vector<1x14x32xf32> to vector<14x32xf32>
    %cst_12 = arith.constant dense<0.000000e+00> : vector<14x64xf32>
    %12 = tpu.matmul %11, %0, %cst_12 {dimension_numbers = #tpu.dot_dimension_numbers<[1], [0], [0], [1], [0, 0, 1, 1], [], []>} : vector<14x32xf32>, vector<32x64xf32>, vector<14x64xf32> -> vector<14x64xf32>
    %c0_13 = arith.constant 0 : index
    %c0_14 = arith.constant 0 : index
    %c0_15 = arith.constant 0 : index
    %13 = vector.load %arg2[%c0_13, %c0_14, %c0_15] : memref<6x64x56xf32, #tpu.memory_space<vmem>>, vector<1x64x56xf32>
    %14 = vector.shape_cast %13 : vector<1x64x56xf32> to vector<64x56xf32>
    %cst_16 = arith.constant dense<0.000000e+00> : vector<14x56xf32>
    %15 = tpu.matmul %3, %14, %cst_16 {dimension_numbers = #tpu.dot_dimension_numbers<[1], [0], [0], [1], [0, 0, 1, 1], [], []>} : vector<14x64xf32>, vector<64x56xf32>, vector<14x56xf32> -> vector<14x56xf32>
    %c2_17 = arith.constant 2 : index
    %c0_18 = arith.constant 0 : index
    %c0_19 = arith.constant 0 : index
    %16 = vector.load %arg2[%c2_17, %c0_18, %c0_19] : memref<6x64x56xf32, #tpu.memory_space<vmem>>, vector<1x64x56xf32>
    %17 = vector.shape_cast %16 : vector<1x64x56xf32> to vector<64x56xf32>
    %cst_20 = arith.constant dense<0.000000e+00> : vector<14x56xf32>
    %18 = tpu.matmul %6, %17, %cst_20 {dimension_numbers = #tpu.dot_dimension_numbers<[1], [0], [0], [1], [0, 0, 1, 1], [], []>} : vector<14x64xf32>, vector<64x56xf32>, vector<14x56xf32> -> vector<14x56xf32>
    %19 = arith.addf %15, %18 : vector<14x56xf32>
    %c4 = arith.constant 4 : index
    %c0_21 = arith.constant 0 : index
    %c0_22 = arith.constant 0 : index
    %20 = vector.load %arg2[%c4, %c0_21, %c0_22] : memref<6x64x56xf32, #tpu.memory_space<vmem>>, vector<1x64x56xf32>
    %21 = vector.shape_cast %20 : vector<1x64x56xf32> to vector<64x56xf32>
    %cst_23 = arith.constant dense<0.000000e+00> : vector<14x56xf32>
    %22 = tpu.matmul %9, %21, %cst_23 {dimension_numbers = #tpu.dot_dimension_numbers<[1], [0], [0], [1], [0, 0, 1, 1], [], []>} : vector<14x64xf32>, vector<64x56xf32>, vector<14x56xf32> -> vector<14x56xf32>
    %23 = arith.addf %19, %22 : vector<14x56xf32>
    %c1_24 = arith.constant 1 : index
    %c0_25 = arith.constant 0 : index
    %c0_26 = arith.constant 0 : index
    %24 = vector.load %arg2[%c1_24, %c0_25, %c0_26] : memref<6x64x56xf32, #tpu.memory_space<vmem>>, vector<1x64x56xf32>
    %25 = vector.shape_cast %24 : vector<1x64x56xf32> to vector<64x56xf32>
    %cst_27 = arith.constant dense<0.000000e+00> : vector<14x56xf32>
    %26 = tpu.matmul %3, %25, %cst_27 {dimension_numbers = #tpu.dot_dimension_numbers<[1], [0], [0], [1], [0, 0, 1, 1], [], []>} : vector<14x64xf32>, vector<64x56xf32>, vector<14x56xf32> -> vector<14x56xf32>
    %c3_28 = arith.constant 3 : index
    %c0_29 = arith.constant 0 : index
    %c0_30 = arith.constant 0 : index
    %27 = vector.load %arg2[%c3_28, %c0_29, %c0_30] : memref<6x64x56xf32, #tpu.memory_space<vmem>>, vector<1x64x56xf32>
    %28 = vector.shape_cast %27 : vector<1x64x56xf32> to vector<64x56xf32>
    %cst_31 = arith.constant dense<0.000000e+00> : vector<14x56xf32>
    %29 = tpu.matmul %6, %28, %cst_31 {dimension_numbers = #tpu.dot_dimension_numbers<[1], [0], [0], [1], [0, 0, 1, 1], [], []>} : vector<14x64xf32>, vector<64x56xf32>, vector<14x56xf32> -> vector<14x56xf32>
    %30 = arith.addf %26, %29 : vector<14x56xf32>
    %c5 = arith.constant 5 : index
    %c0_32 = arith.constant 0 : index
    %c0_33 = arith.constant 0 : index
    %31 = vector.load %arg2[%c5, %c0_32, %c0_33] : memref<6x64x56xf32, #tpu.memory_space<vmem>>, vector<1x64x56xf32>
    %32 = vector.shape_cast %31 : vector<1x64x56xf32> to vector<64x56xf32>
    %cst_34 = arith.constant dense<0.000000e+00> : vector<14x56xf32>
    %33 = tpu.matmul %9, %32, %cst_34 {dimension_numbers = #tpu.dot_dimension_numbers<[1], [0], [0], [1], [0, 0, 1, 1], [], []>} : vector<14x64xf32>, vector<64x56xf32>, vector<14x56xf32> -> vector<14x56xf32>
    %34 = arith.addf %30, %33 : vector<14x56xf32>
    %35 = arith.maximumf %23, %34 : vector<14x56xf32>
    %c0_35 = arith.constant 0 : index
    %c0_36 = arith.constant 0 : index
    %c0_37 = arith.constant 0 : index
    %36 = vector.load %arg2[%c0_35, %c0_36, %c0_37] : memref<6x64x56xf32, #tpu.memory_space<vmem>>, vector<1x64x56xf32>
    %37 = vector.shape_cast %36 : vector<1x64x56xf32> to vector<64x56xf32>
    %cst_38 = arith.constant dense<0.000000e+00> : vector<14x56xf32>
    %38 = tpu.matmul %6, %37, %cst_38 {dimension_numbers = #tpu.dot_dimension_numbers<[1], [0], [0], [1], [0, 0, 1, 1], [], []>} : vector<14x64xf32>, vector<64x56xf32>, vector<14x56xf32> -> vector<14x56xf32>
    %c2_39 = arith.constant 2 : index
    %c0_40 = arith.constant 0 : index
    %c0_41 = arith.constant 0 : index
    %39 = vector.load %arg2[%c2_39, %c0_40, %c0_41] : memref<6x64x56xf32, #tpu.memory_space<vmem>>, vector<1x64x56xf32>
    %40 = vector.shape_cast %39 : vector<1x64x56xf32> to vector<64x56xf32>
    %cst_42 = arith.constant dense<0.000000e+00> : vector<14x56xf32>
    %41 = tpu.matmul %9, %40, %cst_42 {dimension_numbers = #tpu.dot_dimension_numbers<[1], [0], [0], [1], [0, 0, 1, 1], [], []>} : vector<14x64xf32>, vector<64x56xf32>, vector<14x56xf32> -> vector<14x56xf32>
    %42 = arith.addf %38, %41 : vector<14x56xf32>
    %c4_43 = arith.constant 4 : index
    %c0_44 = arith.constant 0 : index
    %c0_45 = arith.constant 0 : index
    %43 = vector.load %arg2[%c4_43, %c0_44, %c0_45] : memref<6x64x56xf32, #tpu.memory_space<vmem>>, vector<1x64x56xf32>
    %44 = vector.shape_cast %43 : vector<1x64x56xf32> to vector<64x56xf32>
    %cst_46 = arith.constant dense<0.000000e+00> : vector<14x56xf32>
    %45 = tpu.matmul %12, %44, %cst_46 {dimension_numbers = #tpu.dot_dimension_numbers<[1], [0], [0], [1], [0, 0, 1, 1], [], []>} : vector<14x64xf32>, vector<64x56xf32>, vector<14x56xf32> -> vector<14x56xf32>
    %46 = arith.addf %42, %45 : vector<14x56xf32>
    %47 = arith.maximumf %35, %46 : vector<14x56xf32>
    %c1_47 = arith.constant 1 : index
    %c0_48 = arith.constant 0 : index
    %c0_49 = arith.constant 0 : index
    %48 = vector.load %arg2[%c1_47, %c0_48, %c0_49] : memref<6x64x56xf32, #tpu.memory_space<vmem>>, vector<1x64x56xf32>
    %49 = vector.shape_cast %48 : vector<1x64x56xf32> to vector<64x56xf32>
    %cst_50 = arith.constant dense<0.000000e+00> : vector<14x56xf32>
    %50 = tpu.matmul %6, %49, %cst_50 {dimension_numbers = #tpu.dot_dimension_numbers<[1], [0], [0], [1], [0, 0, 1, 1], [], []>} : vector<14x64xf32>, vector<64x56xf32>, vector<14x56xf32> -> vector<14x56xf32>
    %c3_51 = arith.constant 3 : index
    %c0_52 = arith.constant 0 : index
    %c0_53 = arith.constant 0 : index
    %51 = vector.load %arg2[%c3_51, %c0_52, %c0_53] : memref<6x64x56xf32, #tpu.memory_space<vmem>>, vector<1x64x56xf32>
    %52 = vector.shape_cast %51 : vector<1x64x56xf32> to vector<64x56xf32>
    %cst_54 = arith.constant dense<0.000000e+00> : vector<14x56xf32>
    %53 = tpu.matmul %9, %52, %cst_54 {dimension_numbers = #tpu.dot_dimension_numbers<[1], [0], [0], [1], [0, 0, 1, 1], [], []>} : vector<14x64xf32>, vector<64x56xf32>, vector<14x56xf32> -> vector<14x56xf32>
    %54 = arith.addf %50, %53 : vector<14x56xf32>
    %c5_55 = arith.constant 5 : index
    %c0_56 = arith.constant 0 : index
    %c0_57 = arith.constant 0 : index
    %55 = vector.load %arg2[%c5_55, %c0_56, %c0_57] : memref<6x64x56xf32, #tpu.memory_space<vmem>>, vector<1x64x56xf32>
    %56 = vector.shape_cast %55 : vector<1x64x56xf32> to vector<64x56xf32>
    %cst_58 = arith.constant dense<0.000000e+00> : vector<14x56xf32>
    %57 = tpu.matmul %12, %56, %cst_58 {dimension_numbers = #tpu.dot_dimension_numbers<[1], [0], [0], [1], [0, 0, 1, 1], [], []>} : vector<14x64xf32>, vector<64x56xf32>, vector<14x56xf32> -> vector<14x56xf32>
    %58 = arith.addf %54, %57 : vector<14x56xf32>
    %59 = arith.maximumf %47, %58 : vector<14x56xf32>
    %c0_59 = arith.constant 0 : index
    %c0_60 = arith.constant 0 : index
    %60 = vector.load %arg3[%c0_59, %c0_60] : memref<1x56xf32, #tpu.memory_space<vmem>>, vector<1x56xf32>
    %61 = vector.broadcast %60 : vector<1x56xf32> to vector<14x56xf32>
    %62 = arith.addf %59, %61 : vector<14x56xf32>
    %cst_61 = arith.constant 0.000000e+00 : f32
    %63 = vector.broadcast %cst_61 : f32 to vector<14x56xf32>
    %64 = arith.maximumf %62, %63 : vector<14x56xf32>
    %c0_62 = arith.constant 0 : index
    %c0_63 = arith.constant 0 : index
    %c0_64 = arith.constant 0 : index
    %65 = vector.load %arg4[%c0_62, %c0_63, %c0_64] : memref<4x4x14xf32, #tpu.memory_space<vmem>>, vector<1x4x14xf32>
    %66 = vector.shape_cast %65 : vector<1x4x14xf32> to vector<4x14xf32>
    %cst_65 = arith.constant dense<0.000000e+00> : vector<4x56xf32>
    %67 = tpu.matmul %66, %64, %cst_65 {dimension_numbers = #tpu.dot_dimension_numbers<[1], [0], [0], [1], [0, 0, 1, 1], [], []>} : vector<4x14xf32>, vector<14x56xf32>, vector<4x56xf32> -> vector<4x56xf32>
    %c1_66 = arith.constant 1 : index
    %c0_67 = arith.constant 0 : index
    %c0_68 = arith.constant 0 : index
    %68 = vector.load %arg4[%c1_66, %c0_67, %c0_68] : memref<4x4x14xf32, #tpu.memory_space<vmem>>, vector<1x4x14xf32>
    %69 = vector.shape_cast %68 : vector<1x4x14xf32> to vector<4x14xf32>
    %cst_69 = arith.constant dense<0.000000e+00> : vector<4x56xf32>
    %70 = tpu.matmul %69, %64, %cst_69 {dimension_numbers = #tpu.dot_dimension_numbers<[1], [0], [0], [1], [0, 0, 1, 1], [], []>} : vector<4x14xf32>, vector<14x56xf32>, vector<4x56xf32> -> vector<4x56xf32>
    %c2_70 = arith.constant 2 : index
    %c0_71 = arith.constant 0 : index
    %c0_72 = arith.constant 0 : index
    %71 = vector.load %arg4[%c2_70, %c0_71, %c0_72] : memref<4x4x14xf32, #tpu.memory_space<vmem>>, vector<1x4x14xf32>
    %72 = vector.shape_cast %71 : vector<1x4x14xf32> to vector<4x14xf32>
    %cst_73 = arith.constant dense<0.000000e+00> : vector<4x56xf32>
    %73 = tpu.matmul %72, %64, %cst_73 {dimension_numbers = #tpu.dot_dimension_numbers<[1], [0], [0], [1], [0, 0, 1, 1], [], []>} : vector<4x14xf32>, vector<14x56xf32>, vector<4x56xf32> -> vector<4x56xf32>
    %c3_74 = arith.constant 3 : index
    %c0_75 = arith.constant 0 : index
    %c0_76 = arith.constant 0 : index
    %74 = vector.load %arg4[%c3_74, %c0_75, %c0_76] : memref<4x4x14xf32, #tpu.memory_space<vmem>>, vector<1x4x14xf32>
    %75 = vector.shape_cast %74 : vector<1x4x14xf32> to vector<4x14xf32>
    %cst_77 = arith.constant dense<0.000000e+00> : vector<4x56xf32>
    %76 = tpu.matmul %75, %64, %cst_77 {dimension_numbers = #tpu.dot_dimension_numbers<[1], [0], [0], [1], [0, 0, 1, 1], [], []>} : vector<4x14xf32>, vector<14x56xf32>, vector<4x56xf32> -> vector<4x56xf32>
    %c0_78 = arith.constant 0 : index
    %c0_79 = arith.constant 0 : index
    %c0_80 = arith.constant 0 : index
    %77 = vector.load %arg5[%c0_78, %c0_79, %c0_80] : memref<6x56x32xf32, #tpu.memory_space<vmem>>, vector<1x56x32xf32>
    %78 = vector.shape_cast %77 : vector<1x56x32xf32> to vector<56x32xf32>
    %cst_81 = arith.constant dense<0.000000e+00> : vector<4x32xf32>
    %79 = tpu.matmul %67, %78, %cst_81 {dimension_numbers = #tpu.dot_dimension_numbers<[1], [0], [0], [1], [0, 0, 1, 1], [], []>} : vector<4x56xf32>, vector<56x32xf32>, vector<4x32xf32> -> vector<4x32xf32>
    %c2_82 = arith.constant 2 : index
    %c0_83 = arith.constant 0 : index
    %c0_84 = arith.constant 0 : index
    %80 = vector.load %arg5[%c2_82, %c0_83, %c0_84] : memref<6x56x32xf32, #tpu.memory_space<vmem>>, vector<1x56x32xf32>
    %81 = vector.shape_cast %80 : vector<1x56x32xf32> to vector<56x32xf32>
    %cst_85 = arith.constant dense<0.000000e+00> : vector<4x32xf32>
    %82 = tpu.matmul %70, %81, %cst_85 {dimension_numbers = #tpu.dot_dimension_numbers<[1], [0], [0], [1], [0, 0, 1, 1], [], []>} : vector<4x56xf32>, vector<56x32xf32>, vector<4x32xf32> -> vector<4x32xf32>
    %83 = arith.addf %79, %82 : vector<4x32xf32>
    %c4_86 = arith.constant 4 : index
    %c0_87 = arith.constant 0 : index
    %c0_88 = arith.constant 0 : index
    %84 = vector.load %arg5[%c4_86, %c0_87, %c0_88] : memref<6x56x32xf32, #tpu.memory_space<vmem>>, vector<1x56x32xf32>
    %85 = vector.shape_cast %84 : vector<1x56x32xf32> to vector<56x32xf32>
    %cst_89 = arith.constant dense<0.000000e+00> : vector<4x32xf32>
    %86 = tpu.matmul %73, %85, %cst_89 {dimension_numbers = #tpu.dot_dimension_numbers<[1], [0], [0], [1], [0, 0, 1, 1], [], []>} : vector<4x56xf32>, vector<56x32xf32>, vector<4x32xf32> -> vector<4x32xf32>
    %87 = arith.addf %83, %86 : vector<4x32xf32>
    %c1_90 = arith.constant 1 : index
    %c0_91 = arith.constant 0 : index
    %c0_92 = arith.constant 0 : index
    %88 = vector.load %arg5[%c1_90, %c0_91, %c0_92] : memref<6x56x32xf32, #tpu.memory_space<vmem>>, vector<1x56x32xf32>
    %89 = vector.shape_cast %88 : vector<1x56x32xf32> to vector<56x32xf32>
    %cst_93 = arith.constant dense<0.000000e+00> : vector<4x32xf32>
    %90 = tpu.matmul %67, %89, %cst_93 {dimension_numbers = #tpu.dot_dimension_numbers<[1], [0], [0], [1], [0, 0, 1, 1], [], []>} : vector<4x56xf32>, vector<56x32xf32>, vector<4x32xf32> -> vector<4x32xf32>
    %c3_94 = arith.constant 3 : index
    %c0_95 = arith.constant 0 : index
    %c0_96 = arith.constant 0 : index
    %91 = vector.load %arg5[%c3_94, %c0_95, %c0_96] : memref<6x56x32xf32, #tpu.memory_space<vmem>>, vector<1x56x32xf32>
    %92 = vector.shape_cast %91 : vector<1x56x32xf32> to vector<56x32xf32>
    %cst_97 = arith.constant dense<0.000000e+00> : vector<4x32xf32>
    %93 = tpu.matmul %70, %92, %cst_97 {dimension_numbers = #tpu.dot_dimension_numbers<[1], [0], [0], [1], [0, 0, 1, 1], [], []>} : vector<4x56xf32>, vector<56x32xf32>, vector<4x32xf32> -> vector<4x32xf32>
    %94 = arith.addf %90, %93 : vector<4x32xf32>
    %c5_98 = arith.constant 5 : index
    %c0_99 = arith.constant 0 : index
    %c0_100 = arith.constant 0 : index
    %95 = vector.load %arg5[%c5_98, %c0_99, %c0_100] : memref<6x56x32xf32, #tpu.memory_space<vmem>>, vector<1x56x32xf32>
    %96 = vector.shape_cast %95 : vector<1x56x32xf32> to vector<56x32xf32>
    %cst_101 = arith.constant dense<0.000000e+00> : vector<4x32xf32>
    %97 = tpu.matmul %73, %96, %cst_101 {dimension_numbers = #tpu.dot_dimension_numbers<[1], [0], [0], [1], [0, 0, 1, 1], [], []>} : vector<4x56xf32>, vector<56x32xf32>, vector<4x32xf32> -> vector<4x32xf32>
    %98 = arith.addf %94, %97 : vector<4x32xf32>
    %99 = arith.maximumf %87, %98 : vector<4x32xf32>
    %c0_102 = arith.constant 0 : index
    %c0_103 = arith.constant 0 : index
    %c0_104 = arith.constant 0 : index
    %100 = vector.load %arg5[%c0_102, %c0_103, %c0_104] : memref<6x56x32xf32, #tpu.memory_space<vmem>>, vector<1x56x32xf32>
    %101 = vector.shape_cast %100 : vector<1x56x32xf32> to vector<56x32xf32>
    %cst_105 = arith.constant dense<0.000000e+00> : vector<4x32xf32>
    %102 = tpu.matmul %70, %101, %cst_105 {dimension_numbers = #tpu.dot_dimension_numbers<[1], [0], [0], [1], [0, 0, 1, 1], [], []>} : vector<4x56xf32>, vector<56x32xf32>, vector<4x32xf32> -> vector<4x32xf32>
    %c2_106 = arith.constant 2 : index
    %c0_107 = arith.constant 0 : index
    %c0_108 = arith.constant 0 : index
    %103 = vector.load %arg5[%c2_106, %c0_107, %c0_108] : memref<6x56x32xf32, #tpu.memory_space<vmem>>, vector<1x56x32xf32>
    %104 = vector.shape_cast %103 : vector<1x56x32xf32> to vector<56x32xf32>
    %cst_109 = arith.constant dense<0.000000e+00> : vector<4x32xf32>
    %105 = tpu.matmul %73, %104, %cst_109 {dimension_numbers = #tpu.dot_dimension_numbers<[1], [0], [0], [1], [0, 0, 1, 1], [], []>} : vector<4x56xf32>, vector<56x32xf32>, vector<4x32xf32> -> vector<4x32xf32>
    %106 = arith.addf %102, %105 : vector<4x32xf32>
    %c4_110 = arith.constant 4 : index
    %c0_111 = arith.constant 0 : index
    %c0_112 = arith.constant 0 : index
    %107 = vector.load %arg5[%c4_110, %c0_111, %c0_112] : memref<6x56x32xf32, #tpu.memory_space<vmem>>, vector<1x56x32xf32>
    %108 = vector.shape_cast %107 : vector<1x56x32xf32> to vector<56x32xf32>
    %cst_113 = arith.constant dense<0.000000e+00> : vector<4x32xf32>
    %109 = tpu.matmul %76, %108, %cst_113 {dimension_numbers = #tpu.dot_dimension_numbers<[1], [0], [0], [1], [0, 0, 1, 1], [], []>} : vector<4x56xf32>, vector<56x32xf32>, vector<4x32xf32> -> vector<4x32xf32>
    %110 = arith.addf %106, %109 : vector<4x32xf32>
    %111 = arith.maximumf %99, %110 : vector<4x32xf32>
    %c1_114 = arith.constant 1 : index
    %c0_115 = arith.constant 0 : index
    %c0_116 = arith.constant 0 : index
    %112 = vector.load %arg5[%c1_114, %c0_115, %c0_116] : memref<6x56x32xf32, #tpu.memory_space<vmem>>, vector<1x56x32xf32>
    %113 = vector.shape_cast %112 : vector<1x56x32xf32> to vector<56x32xf32>
    %cst_117 = arith.constant dense<0.000000e+00> : vector<4x32xf32>
    %114 = tpu.matmul %70, %113, %cst_117 {dimension_numbers = #tpu.dot_dimension_numbers<[1], [0], [0], [1], [0, 0, 1, 1], [], []>} : vector<4x56xf32>, vector<56x32xf32>, vector<4x32xf32> -> vector<4x32xf32>
    %c3_118 = arith.constant 3 : index
    %c0_119 = arith.constant 0 : index
    %c0_120 = arith.constant 0 : index
    %115 = vector.load %arg5[%c3_118, %c0_119, %c0_120] : memref<6x56x32xf32, #tpu.memory_space<vmem>>, vector<1x56x32xf32>
    %116 = vector.shape_cast %115 : vector<1x56x32xf32> to vector<56x32xf32>
    %cst_121 = arith.constant dense<0.000000e+00> : vector<4x32xf32>
    %117 = tpu.matmul %73, %116, %cst_121 {dimension_numbers = #tpu.dot_dimension_numbers<[1], [0], [0], [1], [0, 0, 1, 1], [], []>} : vector<4x56xf32>, vector<56x32xf32>, vector<4x32xf32> -> vector<4x32xf32>
    %118 = arith.addf %114, %117 : vector<4x32xf32>
    %c5_122 = arith.constant 5 : index
    %c0_123 = arith.constant 0 : index
    %c0_124 = arith.constant 0 : index
    %119 = vector.load %arg5[%c5_122, %c0_123, %c0_124] : memref<6x56x32xf32, #tpu.memory_space<vmem>>, vector<1x56x32xf32>
    %120 = vector.shape_cast %119 : vector<1x56x32xf32> to vector<56x32xf32>
    %cst_125 = arith.constant dense<0.000000e+00> : vector<4x32xf32>
    %121 = tpu.matmul %76, %120, %cst_125 {dimension_numbers = #tpu.dot_dimension_numbers<[1], [0], [0], [1], [0, 0, 1, 1], [], []>} : vector<4x56xf32>, vector<56x32xf32>, vector<4x32xf32> -> vector<4x32xf32>
    %122 = arith.addf %118, %121 : vector<4x32xf32>
    %123 = arith.maximumf %111, %122 : vector<4x32xf32>
    %c0_126 = arith.constant 0 : index
    %c0_127 = arith.constant 0 : index
    %124 = vector.load %arg6[%c0_126, %c0_127] : memref<1x32xf32, #tpu.memory_space<vmem>>, vector<1x32xf32>
    %125 = vector.broadcast %124 : vector<1x32xf32> to vector<4x32xf32>
    %126 = arith.addf %123, %125 : vector<4x32xf32>
    %cst_128 = arith.constant 0.000000e+00 : f32
    %127 = vector.broadcast %cst_128 : f32 to vector<4x32xf32>
    %128 = arith.maximumf %126, %127 : vector<4x32xf32>
    %c0_129 = arith.constant 0 : index
    %c0_130 = arith.constant 0 : index
    %c0_131 = arith.constant 0 : index
    %129 = vector.load %arg7[%c0_129, %c0_130, %c0_131] : memref<2x2x4xf32, #tpu.memory_space<vmem>>, vector<1x2x4xf32>
    %130 = vector.shape_cast %129 : vector<1x2x4xf32> to vector<2x4xf32>
    %cst_132 = arith.constant dense<0.000000e+00> : vector<2x32xf32>
    %131 = tpu.matmul %130, %128, %cst_132 {dimension_numbers = #tpu.dot_dimension_numbers<[1], [0], [0], [1], [0, 0, 1, 1], [], []>} : vector<2x4xf32>, vector<4x32xf32>, vector<2x32xf32> -> vector<2x32xf32>
    %c0_133 = arith.constant 0 : index
    %c0_134 = arith.constant 0 : index
    %c0_135 = arith.constant 0 : index
    %132 = vector.load %arg8[%c0_133, %c0_134, %c0_135] : memref<2x32x32xf32, #tpu.memory_space<vmem>>, vector<1x32x32xf32>
    %133 = vector.shape_cast %132 : vector<1x32x32xf32> to vector<32x32xf32>
    %cst_136 = arith.constant dense<0.000000e+00> : vector<2x32xf32>
    %134 = tpu.matmul %131, %133, %cst_136 {dimension_numbers = #tpu.dot_dimension_numbers<[1], [0], [0], [1], [0, 0, 1, 1], [], []>} : vector<2x32xf32>, vector<32x32xf32>, vector<2x32xf32> -> vector<2x32xf32>
    %c1_137 = arith.constant 1 : index
    %c0_138 = arith.constant 0 : index
    %c0_139 = arith.constant 0 : index
    %135 = vector.load %arg7[%c1_137, %c0_138, %c0_139] : memref<2x2x4xf32, #tpu.memory_space<vmem>>, vector<1x2x4xf32>
    %136 = vector.shape_cast %135 : vector<1x2x4xf32> to vector<2x4xf32>
    %cst_140 = arith.constant dense<0.000000e+00> : vector<2x32xf32>
    %137 = tpu.matmul %136, %128, %cst_140 {dimension_numbers = #tpu.dot_dimension_numbers<[1], [0], [0], [1], [0, 0, 1, 1], [], []>} : vector<2x4xf32>, vector<4x32xf32>, vector<2x32xf32> -> vector<2x32xf32>
    %c1_141 = arith.constant 1 : index
    %c0_142 = arith.constant 0 : index
    %c0_143 = arith.constant 0 : index
    %138 = vector.load %arg8[%c1_141, %c0_142, %c0_143] : memref<2x32x32xf32, #tpu.memory_space<vmem>>, vector<1x32x32xf32>
    %139 = vector.shape_cast %138 : vector<1x32x32xf32> to vector<32x32xf32>
    %cst_144 = arith.constant dense<0.000000e+00> : vector<2x32xf32>
    %140 = tpu.matmul %137, %139, %cst_144 {dimension_numbers = #tpu.dot_dimension_numbers<[1], [0], [0], [1], [0, 0, 1, 1], [], []>} : vector<2x32xf32>, vector<32x32xf32>, vector<2x32xf32> -> vector<2x32xf32>
    %141 = arith.addf %134, %140 : vector<2x32xf32>
    %c0_145 = arith.constant 0 : index
    %c0_146 = arith.constant 0 : index
    %142 = vector.load %arg9[%c0_145, %c0_146] : memref<1x32xf32, #tpu.memory_space<vmem>>, vector<1x32xf32>
    %143 = vector.broadcast %142 : vector<1x32xf32> to vector<2x32xf32>
    %144 = arith.addf %141, %143 : vector<2x32xf32>
    %cst_147 = arith.constant 0.000000e+00 : f32
    %145 = vector.broadcast %cst_147 : f32 to vector<2x32xf32>
    %146 = arith.maximumf %144, %145 : vector<2x32xf32>
    %c0_148 = arith.constant 0 : index
    %c0_149 = arith.constant 0 : index
    %147 = vector.load %arg10[%c0_148, %c0_149] : memref<32x10xf32, #tpu.memory_space<vmem>>, vector<32x10xf32>
    %cst_150 = arith.constant dense<0.000000e+00> : vector<2x10xf32>
    %148 = tpu.matmul %146, %147, %cst_150 {dimension_numbers = #tpu.dot_dimension_numbers<[1], [0], [0], [1], [0, 0, 1, 1], [], []>} : vector<2x32xf32>, vector<32x10xf32>, vector<2x10xf32> -> vector<2x10xf32>
    %c0_151 = arith.constant 0 : index
    %c0_152 = arith.constant 0 : index
    %149 = vector.load %arg11[%c0_151, %c0_152] : memref<1x10xf32, #tpu.memory_space<vmem>>, vector<1x10xf32>
    %150 = vector.broadcast %149 : vector<1x10xf32> to vector<2x10xf32>
    %151 = arith.addf %148, %150 : vector<2x10xf32>
    %cst_153 = arith.constant dense<0xFF800000> : vector<2xf32>
    %152 = vector.multi_reduction <maximumf>, %151, %cst_153 [1] : vector<2x10xf32> to vector<2xf32>
    %153 = vector.shape_cast %152 : vector<2xf32> to vector<2x1xf32>
    %154 = vector.broadcast %153 : vector<2x1xf32> to vector<2x10xf32>
    %155 = arith.subf %151, %154 : vector<2x10xf32>
    %156 = math.exp %155 : vector<2x10xf32>
    %cst_154 = arith.constant dense<0.000000e+00> : vector<2xf32>
    %157 = vector.multi_reduction <add>, %156, %cst_154 [1] : vector<2x10xf32> to vector<2xf32>
    %158 = vector.shape_cast %157 : vector<2xf32> to vector<2x1xf32>
    %159 = math.log %158 : vector<2x1xf32>
    %160 = arith.addf %153, %159 : vector<2x1xf32>
    %161 = vector.broadcast %160 : vector<2x1xf32> to vector<2x10xf32>
    %162 = arith.subf %151, %161 : vector<2x10xf32>
    %c0_155 = arith.constant 0 : index
    %c0_156 = arith.constant 0 : index
    %163 = vector.load %arg12[%c0_155, %c0_156] : memref<2x10xf32, #tpu.memory_space<vmem>>, vector<2x10xf32>
    tpu.vector_store %arg12[%c0_155, %c0_156], %162 {strides = array<i32>} : memref<2x10xf32, #tpu.memory_space<vmem>>, vector<2x10xf32>,
    return
  }
}

</mosaic_0001>

<bundles_post_ra>
// kernel: _lambda_.1
= control target key start
LH: loop header
LB: loop body
LE: loop exit
PB: predicated region body
PF: predicated region fallthrough
CT: control target
= control target key end

     0   :  { %vm48_vm0 = vcmask 261120   ;;  %s5192_s0 = inlined_call_operand.vmem [shape: f32[32,64], index: 0, kind: input, shape index: {}]   ;;  %s5193_s1 = inlined_call_operand.vmem [shape: f32[4,14,32], index: 1, kind: input, shape index: {}]   ;;  %s5194_s2 = inlined_call_operand.vmem [shape: f32[6,64,56], index: 2, kind: input, shape index: {}]   ;;  %s5195_s3 = inlined_call_operand.vmem [shape: f32[1,56], index: 3, kind: input, shape index: {}]   ;;  %s5196_s4 = inlined_call_operand.vmem [shape: f32[4,4,14], index: 4, kind: input, shape index: {}]   ;;  %s5197_s5 = inlined_call_operand.vmem [shape: f32[6,56,32], index: 5, kind: input, shape index: {}]   ;;  %s5198_s6 = inlined_call_operand.vmem [shape: f32[1,32], index: 6, kind: input, shape index: {}]   ;;  %s5199_s7 = inlined_call_operand.vmem [shape: f32[2,2,4], index: 7, kind: input, shape index: {}]   ;;  %s5200_s8 = inlined_call_operand.vmem [shape: f32[2,32,32], index: 8, kind: input, shape index: {}]   ;;  %s5201_s9 = inlined_call_operand.vmem [shape: f32[1,32], index: 9, kind: input, shape index: {}]   ;;  %s5202_s10 = inlined_call_operand.vmem [shape: f32[32,10], index: 10, kind: input, shape index: {}]   ;;  %s5203_s11 = inlined_call_operand.vmem [shape: f32[1,10], index: 11, kind: input, shape index: {}]   ;;  %s5204_s12 = inlined_call_operand.hbm [shape: f32[2,10], index: 12, kind: output, shape index: {}]  }
   0x1   :  { %v45_v0 = vld [vmem:[%s5192_s0 + $0x18] sm:$0xff]  ;;  %v44_v1 = vld [vmem:[%s5192_s0 + $0x10] sm:$0xff]  ;;  %v43_v2 = vld [vmem:[%s5192_s0 + $0x8] sm:$0xff] }
   0x2   :  { %3459 = vmatprep.subr.mxu0 %v45_v0  ;;  %3470 = vmatprep.subr.mxu1 %v45_v0  ;;  %v42_v3 = vld [vmem:[%s5192_s0] sm:$0xff]  ;;  %v3038_v5 = vld [vmem:[%s5193_s1 + $0x10] sm:$0xff]  ;;  %v47_v6 = vld [vmem:[%s5193_s1 + $0x8] sm:$0x3f] }
   0x3   :  { %3460 = vmatpush3.msra.mxu0 %v45_v0  ;;  %3471 = vmatpush3.msra.mxu1 %v45_v0  ;;  %v46_v4 = vld [vmem:[%s5193_s1] sm:$0xff]  ;;  %v3039_v7 = vld [vmem:[%s5193_s1 + $0x18] sm:$0x3f] }
   0x4   :  { %3461 = vmatprep.subr.mxu0 %v44_v1  ;;  %3472 = vmatprep.subr.mxu1 %v44_v1  ;;  %v3042_v8 = vld [vmem:[%s5193_s1 + $0x20] sm:$0xff] }
   0x5   :  { %3462 = vmatpush3.msra.mxu0 %v44_v1  ;;  %3473 = vmatpush3.msra.mxu1 %v44_v1 }
   0x6   :  { %3463 = vmatprep.subr.mxu0 %v43_v2  ;;  %3474 = vmatprep.subr.mxu1 %v43_v2 }
   0x7   :  { %3464 = vmatpush3.msra.mxu0 %v43_v2  ;;  %3475 = vmatpush3.msra.mxu1 %v43_v2 }
   0x8   :  { %3465 = vmatprep.subr.mxu0 %v42_v3  ;;  %3476 = vmatprep.subr.mxu1 %v42_v3 }
   0x9   :  { %3466 = vmatpush3.msra.mxu0 %v42_v3  ;;  %3467 = vmatprep.mubr.msk.f32.mxu0 %vm48_vm0, %v46_v4 }
   0xa   :  { %17 = vsyncpa [#allocation3], 0  ;;  %3477 = vmatpush3.msra.mxu1 %v42_v3  ;;  %3478 = vmatprep.mubr.msk.f32.mxu1 %vm48_vm0, %v3038_v5  ;;  %v3043_v9 = vld [vmem:[%s5193_s1 + $0x28] sm:$0x3f]  ;;  %v3046_v10 = vld [vmem:[%s5193_s1 + $0x30] sm:$0xff]  ;;  %vm399_vm1 = vcmask 523264  }
   0xb   :  { %3468 = vmatmul.mubr.msk.f32.vlgmr.msra.gmra.mxu0 %vm48_vm0, %v47_v6  ;;  %3479 = vmatmul.mubr.msk.f32.vlgmr.msra.gmra.mxu1 %vm48_vm0, %v3039_v7  ;;  %v4144_v11 = vld [vmem:[%s5194_s2 + $0xb8] sm:$0xff]  ;;  %v4160_v14 = vld [vmem:[%s5194_s2 + $0xb0] sm:$0xff]  ;;  %v4174_v16 = vld [vmem:[%s5194_s2 + $0xa8] sm:$0xff]  ;;  %v4035_v4 = vmov 0.0   ;;  %vm4036_vm2 = vmmov 0   ;;  %vm1390_vm3 = vcmask 1045504  }
   0xc   :  { %3481 = vmatprep.subr.mxu0 %v45_v0  ;;  %3489 = vmatprep.mubr.msk.f32.mxu0 %vm48_vm0, %v3042_v8  ;;  %v3047_v12 = vld [vmem:[%s5193_s1 + $0x38] sm:$0x3f]  ;;  %v4165_v15 = vld [vmem:[%s5194_s2 + $0x30] sm:$0xff]  ;;  %v4179_v17 = vld [vmem:[%s5194_s2 + $0x28] sm:$0xff]  ;;  %vm1386_vm4 = vcmask 113664   ;;  %vm1704_vm5 = vcmask 457728  }
   0xd   :  { %3482 = vmatpush3.msra.mxu0 %v45_v0  ;;  %3492 = vmatprep.subr.mxu1 %v45_v0  ;;  %v4152_v13 = vld [vmem:[%s5194_s2 + $0x38] sm:$0xff]  ;;  %v4188_v18 = vld [vmem:[%s5194_s2 + $0xa0] sm:$0xff]  ;;  %v4216_v22 = vld [vmem:[%s5194_s2 + $0x90] sm:$0xff]  ;;  %vm2610_vm6 = vcmask 1043456   ;;  %vm2606_vm7 = vcmask 31744   ;;  %vm3007_vm8 = vcmask 74752  }
   0xe   :  { %3483 = vmatprep.subr.mxu0 %v44_v1  ;;  %3493 = vmatpush3.msra.mxu1 %v45_v0  ;;  %v4193_v19 = vld [vmem:[%s5194_s2 + $0x20] sm:$0xff]  ;;  %v4202_v20 = vld [vmem:[%s5194_s2 + $0x98] sm:$0xff]  ;;  %v4221_v23 = vld [vmem:[%s5194_s2 + $0x10] sm:$0xff] }
   0xf   :  { %3484 = vmatpush3.msra.mxu0 %v44_v1  ;;  %3494 = vmatprep.subr.mxu1 %v44_v1  ;;  %v4207_v21 = vld [vmem:[%s5194_s2 + $0x18] sm:$0xff]  ;;  %v4230_v24 = vld [vmem:[%s5194_s2 + $0x88] sm:$0xff]  ;;  %v4248_v26 = vld [vmem:[%s5194_s2 + $0x80] sm:$0xff] }
  0x10   :  { %3485 = vmatprep.subr.mxu0 %v43_v2  ;;  %3495 = vmatpush3.msra.mxu1 %v44_v1  ;;  %v4235_v25 = vld [vmem:[%s5194_s2 + $0x8] sm:$0xff]  ;;  %v4253_v27 = vld [vmem:[%s5194_s2] sm:$0xff]  ;;  %v4262_v28 = vld [vmem:[%s5194_s2 + $0x138] sm:$0xff] }
  0x11   :  { %3486 = vmatpush3.msra.mxu0 %v43_v2  ;;  %3496 = vmatprep.subr.mxu1 %v43_v2  ;;  %v4267_v29 = vld [vmem:[%s5194_s2 + $0xf8] sm:$0xff]  ;;  %v4286_v34 = vld [vmem:[%s5194_s2 + $0x130] sm:$0xff]  ;;  %v4302_v36 = vld [vmem:[%s5194_s2 + $0x128] sm:$0xff] }
  0x12   :  { %3487 = vmatprep.subr.mxu0 %v42_v3  ;;  %3497 = vmatpush3.msra.mxu1 %v43_v2  ;;  %v4291_v35 = vld [vmem:[%s5194_s2 + $0xf0] sm:$0xff]  ;;  %v4309_v37 = vld [vmem:[%s5194_s2 + $0xe8] sm:$0xff]  ;;  %v4317_v38 = vld [vmem:[%s5194_s2 + $0x120] sm:$0xff] }
  0x13   :  { %3488 = vmatpush3.msra.mxu0 %v42_v3  ;;  %3498 = vmatprep.subr.mxu1 %v42_v3  ;;  %v4324_v39 = vld [vmem:[%s5194_s2 + $0xe0] sm:$0xff]  ;;  %v4331_v40 = vld [vmem:[%s5194_s2 + $0x118] sm:$0xff]  ;;  %v4345_v42 = vld [vmem:[%s5194_s2 + $0x110] sm:$0xff] }
  0x14   :  { %3490 = vmatmul.mubr.msk.f32.vlgmr.msra.gmra.mxu0 %vm48_vm0, %v3043_v9  ;;  %3499 = vmatpush3.msra.mxu1 %v42_v3  ;;  %v4338_v41 = vld [vmem:[%s5194_s2 + $0xd8] sm:$0xff]  ;;  %v4352_v43 = vld [vmem:[%s5194_s2 + $0xd0] sm:$0xff]  ;;  %v4361_v45 = vld [vmem:[%s5194_s2 + $0x108] sm:$0xff] }
  0x15   :  { %3500 = vmatprep.mubr.msk.f32.mxu1 %vm48_vm0, %v3046_v10  ;;  %3503 = vmatprep.subr.mxu0 %v4144_v11  ;;  %v4368_v46 = vld [vmem:[%s5194_s2 + $0xc8] sm:$0xff]  ;;  %v4375_v47 = vld [vmem:[%s5194_s2 + $0x100] sm:$0xff]  ;;  %v4396_v50 = vld [vmem:[%s5194_s2 + $0x78] sm:$0xff] }
  0x16   :  { %3501 = vmatmul.mubr.msk.f32.vlgmr.msra.gmra.mxu1 %vm48_vm0, %v3047_v12  ;;  %3522 = vmatprep.subr.mxu1 %v4152_v13  ;;  %v4384_v49 = vld [vmem:[%s5194_s2 + $0xc0] sm:$0xff]  ;;  %v4401_v51 = vld [vmem:[%s5194_s2 + $0x178] sm:$0xff]  ;;  %v4414_v52 = vld [vmem:[%s5194_s2 + $0x70] sm:$0xff] }
  0x17   :  { %3504 = vmatpush3.msra.mxu0 %v4144_v11  ;;  %3523 = vmatpush3.msra.mxu1 %v4152_v13  ;;  %v4419_v53 = vld [vmem:[%s5194_s2 + $0x170] sm:$0xff]  ;;  %v4430_v54 = vld [vmem:[%s5194_s2 + $0x68] sm:$0xff]  ;;  %v4444_v56 = vld [vmem:[%s5194_s2 + $0x60] sm:$0xff] }
  0x18   :  { %3505 = vmatprep.subr.mxu0 %v4160_v14  ;;  %3524 = vmatprep.subr.mxu1 %v4165_v15  ;;  %v4435_v55 = vld [vmem:[%s5194_s2 + $0x168] sm:$0xff]  ;;  %v4449_v57 = vld [vmem:[%s5194_s2 + $0x160] sm:$0xff]  ;;  %v4458_v58 = vld [vmem:[%s5194_s2 + $0x58] sm:$0xff] }
  0x19   :  { %3506 = vmatpush3.msra.mxu0 %v4160_v14  ;;  %3525 = vmatpush3.msra.mxu1 %v4165_v15  ;;  %v4463_v59 = vld [vmem:[%s5194_s2 + $0x158] sm:$0xff]  ;;  %v4472_v60 = vld [vmem:[%s5194_s2 + $0x50] sm:$0xff]  ;;  %v4486_v62 = vld [vmem:[%s5194_s2 + $0x48] sm:$0xff] }
  0x1a   :  { %3507 = vmatprep.subr.mxu0 %v4174_v16  ;;  %3526 = vmatprep.subr.mxu1 %v4179_v17  ;;  %v4477_v61 = vld [vmem:[%s5194_s2 + $0x150] sm:$0xff]  ;;  %v4491_v63 = vld [vmem:[%s5194_s2 + $0x148] sm:$0xff]  ;;  %v4500_v0 = vld [vmem:[%s5194_s2 + $0x40] sm:$0xff] }
  0x1b   :  { %3508 = vmatpush3.msra.mxu0 %v4174_v16  ;;  %3527 = vmatpush3.msra.mxu1 %v4179_v17  ;;  %v4505_v1 = vld [vmem:[%s5194_s2 + $0x140] sm:$0xff] }
  0x1c   :  { %3509 = vmatprep.subr.mxu0 %v4188_v18  ;;  %3528 = vmatprep.subr.mxu1 %v4193_v19 }
  0x1d   :  { %3510 = vmatpush3.msra.mxu0 %v4188_v18  ;;  %3529 = vmatpush3.msra.mxu1 %v4193_v19 }
  0x1e   :  { %3511 = vmatprep.subr.mxu0 %v4202_v20  ;;  %3530 = vmatprep.subr.mxu1 %v4207_v21 }
  0x1f   :  { %3512 = vmatpush3.msra.mxu0 %v4202_v20  ;;  %3531 = vmatpush3.msra.mxu1 %v4207_v21 }
  0x20   :  { %3513 = vmatprep.subr.mxu0 %v4216_v22  ;;  %3532 = vmatprep.subr.mxu1 %v4221_v23 }
  0x21   :  { %3514 = vmatpush3.msra.mxu0 %v4216_v22  ;;  %3533 = vmatpush3.msra.mxu1 %v4221_v23 }
  0x22   :  { %3515 = vmatprep.subr.mxu0 %v4230_v24  ;;  %3534 = vmatprep.subr.mxu1 %v4235_v25 }
  0x23   :  { %3516 = vmatpush3.msra.mxu0 %v4230_v24  ;;  %3535 = vmatpush3.msra.mxu1 %v4235_v25 }
  0x24   :  { %3517 = vmatprep.subr.mxu0 %v4248_v26  ;;  %3536 = vmatprep.subr.mxu1 %v4253_v27 }
  0x25   :  { %3518 = vmatpush3.msra.mxu0 %v4248_v26  ;;  %3537 = vmatpush3.msra.mxu1 %v4253_v27 }
  0x26   :  { %3541 = vmatprep.subr.mxu0 %v4262_v28  ;;  %3560 = vmatprep.subr.mxu1 %v4267_v29 }
  0xcb   :  { %v4271_v30 = vpop.f32.mrf.mxu0  ;;  %v4273_v31 = vpop.f32.mrf.mxu1 }
  0xcd   :  { %v4275_v32 = vpop.f32.mrf.mxu0  ;;  %v4277_v33 = vpop.f32.mrf.mxu1 }
  0xce   :  { %3519 = vmatprep.mubr.msk.f32.mxu0 %vm399_vm1, %v4277_v33  ;;  %3538 = vmatprep.mubr.msk.f32.mxu1 %vm399_vm1, %v4275_v32 }
  0xcf   :  { %3520 = vmatmul.mubr.msk.f32.vlgmr.msra.gmra.mxu0 %vm399_vm1, %v4273_v31  ;;  %3539 = vmatmul.mubr.msk.f32.vlgmr.msra.gmra.mxu1 %vm399_vm1, %v4271_v30 }
  0xd0   :  { %3542 = vmatpush3.msra.mxu0 %v4262_v28  ;;  %3561 = vmatpush3.msra.mxu1 %v4267_v29 }
  0xd1   :  { %3543 = vmatprep.subr.mxu0 %v4286_v34  ;;  %3562 = vmatprep.subr.mxu1 %v4291_v35 }
  0xd2   :  { %3576 = vmatprep.mubr.msk.f32.mxu1 %vm399_vm1, %v4277_v33  ;;  %3544 = vmatpush3.msra.mxu0 %v4286_v34 }
  0xd3   :  { %3563 = vmatpush3.msra.mxu1 %v4291_v35  ;;  %3545 = vmatprep.subr.mxu0 %v4302_v36 }
  0xd4   :  { %3564 = vmatprep.subr.mxu1 %v4309_v37  ;;  %3546 = vmatpush3.msra.mxu0 %v4302_v36  ;;  %v4354_v44 = vpop.f32.mrf.mxu0 }
  0xd5   :  { %3565 = vmatpush3.msra.mxu1 %v4309_v37  ;;  %3547 = vmatprep.subr.mxu0 %v4317_v38 }
  0xd6   :  { %3566 = vmatprep.subr.mxu1 %v4324_v39  ;;  %3548 = vmatpush3.msra.mxu0 %v4317_v38  ;;  %v4379_v48 = vpop.f32.mrf.mxu0  ;;  %v3502_v2 = vpop.f32.mrf.mxu1 }
  0xd7   :  { %3567 = vmatpush3.msra.mxu1 %v4324_v39  ;;  %3549 = vmatprep.subr.mxu0 %v4331_v40 }
  0xd8   :  { %3568 = vmatprep.subr.mxu1 %v4338_v41  ;;  %3550 = vmatpush3.msra.mxu0 %v4331_v40  ;;  %v373_v3 = vpop.f32.mrf.mxu1 }
  0xd9   :  { %3569 = vmatpush3.msra.mxu1 %v4338_v41  ;;  %3551 = vmatprep.subr.mxu0 %v4345_v42 }
  0xda   :  { %3570 = vmatprep.subr.mxu1 %v4352_v43  ;;  %3552 = vmatpush3.msra.mxu0 %v4345_v42 }
  0xdb   :  { %3571 = vmatpush3.msra.mxu1 %v4352_v43  ;;  %3553 = vmatprep.subr.mxu0 %v4361_v45 }
  0xdc   :  { %3572 = vmatprep.subr.mxu1 %v4368_v46  ;;  %3554 = vmatpush3.msra.mxu0 %v4361_v45 }
  0xdd   :  { %3573 = vmatpush3.msra.mxu1 %v4368_v46  ;;  %3555 = vmatprep.subr.mxu0 %v4375_v47 }
  0xde   :  { %3557 = vmatprep.mubr.msk.f32.mxu0 %vm399_vm1, %v4379_v48  ;;  %3574 = vmatprep.subr.mxu1 %v4384_v49 }
  0xdf   :  { %3556 = vmatpush3.msra.mxu0 %v4375_v47  ;;  %3575 = vmatpush3.msra.mxu1 %v4384_v49 }
  0xe0   :  { %3558 = vmatmul.mubr.msk.f32.vlgmr.msra.gmra.mxu0 %vm399_vm1, %v4354_v44  ;;  %3577 = vmatmul.mubr.msk.f32.vlgmr.msra.gmra.mxu1 %vm399_vm1, %v4273_v31 }
  0xe1   :  { %3579 = vmatprep.subr.mxu0 %v4396_v50  ;;  %3598 = vmatprep.subr.mxu1 %v4401_v51 }
  0xe2   :  { %3580 = vmatpush3.msra.mxu0 %v4396_v50  ;;  %3595 = vmatprep.mubr.msk.f32.mxu0 %vm399_vm1, %v4275_v32 }
  0xe3   :  { %3599 = vmatpush3.msra.mxu1 %v4401_v51  ;;  %3614 = vmatprep.mubr.msk.f32.mxu1 %vm399_vm1, %v4379_v48 }
  0xe4   :  { %3581 = vmatprep.subr.mxu0 %v4414_v52  ;;  %3600 = vmatprep.subr.mxu1 %v4419_v53 }
  0xe5   :  { %3582 = vmatpush3.msra.mxu0 %v4414_v52  ;;  %3601 = vmatpush3.msra.mxu1 %v4419_v53 }
  0xe6   :  { %3583 = vmatprep.subr.mxu0 %v4430_v54  ;;  %3602 = vmatprep.subr.mxu1 %v4435_v55 }
  0xe7   :  { %3584 = vmatpush3.msra.mxu0 %v4430_v54  ;;  %3603 = vmatpush3.msra.mxu1 %v4435_v55 }
  0xe8   :  { %3585 = vmatprep.subr.mxu0 %v4444_v56  ;;  %3604 = vmatprep.subr.mxu1 %v4449_v57 }
  0xe9   :  { %3586 = vmatpush3.msra.mxu0 %v4444_v56  ;;  %3605 = vmatpush3.msra.mxu1 %v4449_v57 }
  0xea   :  { %3587 = vmatprep.subr.mxu0 %v4458_v58  ;;  %3606 = vmatprep.subr.mxu1 %v4463_v59 }
  0xeb   :  { %3588 = vmatpush3.msra.mxu0 %v4458_v58  ;;  %3607 = vmatpush3.msra.mxu1 %v4463_v59 }
  0xec   :  { %3589 = vmatprep.subr.mxu0 %v4472_v60  ;;  %3608 = vmatprep.subr.mxu1 %v4477_v61 }
  0xed   :  { %3590 = vmatpush3.msra.mxu0 %v4472_v60  ;;  %3609 = vmatpush3.msra.mxu1 %v4477_v61 }
  0xee   :  { %3591 = vmatprep.subr.mxu0 %v4486_v62  ;;  %3610 = vmatprep.subr.mxu1 %v4491_v63 }
  0xef   :  { %3592 = vmatpush3.msra.mxu0 %v4486_v62  ;;  %3611 = vmatpush3.msra.mxu1 %v4491_v63 }
  0xf0   :  { %3593 = vmatprep.subr.mxu0 %v4500_v0  ;;  %3612 = vmatprep.subr.mxu1 %v4505_v1 }
  0xf1   :  { %3594 = vmatpush3.msra.mxu0 %v4500_v0  ;;  %3613 = vmatpush3.msra.mxu1 %v4505_v1 }
  0xf2   :  { %3596 = vmatmul.mubr.msk.f32.vlgmr.msra.gmra.mxu0 %vm399_vm1, %v4271_v30  ;;  %3615 = vmatmul.mubr.msk.f32.vlgmr.msra.gmra.mxu1 %vm399_vm1, %v4354_v44 }
  0xf3   :  { %3617 = vmatprep.subr.mxu0 %v4144_v11  ;;  %3636 = vmatprep.subr.mxu1 %v4152_v13 }
  0xf4   :  { %3618 = vmatpush3.msra.mxu0 %v4144_v11  ;;  %3633 = vmatprep.mubr.msk.f32.mxu0 %vm399_vm1, %v4379_v48 }
  0xf5   :  { %3637 = vmatpush3.msra.mxu1 %v4152_v13  ;;  %3652 = vmatprep.mubr.msk.f32.mxu1 %vm399_vm1, %v4277_v33 }
  0xf6   :  { %3619 = vmatprep.subr.mxu0 %v4160_v14  ;;  %3638 = vmatprep.subr.mxu1 %v4165_v15 }
  0xf7   :  { %3620 = vmatpush3.msra.mxu0 %v4160_v14  ;;  %3639 = vmatpush3.msra.mxu1 %v4165_v15 }
  0xf8   :  { %3621 = vmatprep.subr.mxu0 %v4174_v16  ;;  %3640 = vmatprep.subr.mxu1 %v4179_v17 }
  0xf9   :  { %3622 = vmatpush3.msra.mxu0 %v4174_v16  ;;  %3641 = vmatpush3.msra.mxu1 %v4179_v17 }
  0xfa   :  { %3623 = vmatprep.subr.mxu0 %v4188_v18  ;;  %3642 = vmatprep.subr.mxu1 %v4193_v19 }
  0xfb   :  { %3624 = vmatpush3.msra.mxu0 %v4188_v18  ;;  %3643 = vmatpush3.msra.mxu1 %v4193_v19 }
  0xfc   :  { %3625 = vmatprep.subr.mxu0 %v4202_v20  ;;  %3644 = vmatprep.subr.mxu1 %v4207_v21 }
  0xfd   :  { %3626 = vmatpush3.msra.mxu0 %v4202_v20  ;;  %3645 = vmatpush3.msra.mxu1 %v4207_v21 }
  0xfe   :  { %3627 = vmatprep.subr.mxu0 %v4216_v22  ;;  %3646 = vmatprep.subr.mxu1 %v4221_v23 }
  0xff   :  { %3628 = vmatpush3.msra.mxu0 %v4216_v22  ;;  %3647 = vmatpush3.msra.mxu1 %v4221_v23 }
 0x100   :  { %3629 = vmatprep.subr.mxu0 %v4230_v24  ;;  %3648 = vmatprep.subr.mxu1 %v4235_v25 }
 0x101   :  { %3630 = vmatpush3.msra.mxu0 %v4230_v24  ;;  %3649 = vmatpush3.msra.mxu1 %v4235_v25 }
 0x102   :  { %3631 = vmatprep.subr.mxu0 %v4248_v26  ;;  %3650 = vmatprep.subr.mxu1 %v4253_v27 }
 0x103   :  { %3632 = vmatpush3.msra.mxu0 %v4248_v26  ;;  %3651 = vmatpush3.msra.mxu1 %v4253_v27 }
 0x104   :  { %3634 = vmatmul.mubr.msk.f32.vlgmr.msra.gmra.mxu0 %vm399_vm1, %v4354_v44  ;;  %3653 = vmatmul.mubr.msk.f32.vlgmr.msra.gmra.mxu1 %vm399_vm1, %v4273_v31 }
 0x105   :  { %3655 = vmatprep.subr.mxu0 %v4262_v28  ;;  %3674 = vmatprep.subr.mxu1 %v4267_v29 }
 0x106   :  { %3656 = vmatpush3.msra.mxu0 %v4262_v28  ;;  %3675 = vmatpush3.msra.mxu1 %v4267_v29 }
 0x107   :  { %3690 = vmatprep.mubr.msk.f32.mxu1 %vm399_vm1, %v4379_v48  ;;  %3657 = vmatprep.subr.mxu0 %v4286_v34 }
 0x108   :  { %3676 = vmatprep.subr.mxu1 %v4291_v35  ;;  %3658 = vmatpush3.msra.mxu0 %v4286_v34 }
 0x109   :  { %3677 = vmatpush3.msra.mxu1 %v4291_v35  ;;  %3659 = vmatprep.subr.mxu0 %v4302_v36 }
 0x10a   :  { %3678 = vmatprep.subr.mxu1 %v4309_v37  ;;  %3660 = vmatpush3.msra.mxu0 %v4302_v36 }
 0x10b   :  { %3679 = vmatpush3.msra.mxu1 %v4309_v37  ;;  %3661 = vmatprep.subr.mxu0 %v4317_v38 }
 0x10c   :  { %3680 = vmatprep.subr.mxu1 %v4324_v39  ;;  %3662 = vmatpush3.msra.mxu0 %v4317_v38 }
 0x10d   :  { %3681 = vmatpush3.msra.mxu1 %v4324_v39  ;;  %3663 = vmatprep.subr.mxu0 %v4331_v40 }
 0x10e   :  { %3682 = vmatprep.subr.mxu1 %v4338_v41  ;;  %3664 = vmatpush3.msra.mxu0 %v4331_v40 }
 0x10f   :  { %3683 = vmatpush3.msra.mxu1 %v4338_v41  ;;  %3665 = vmatprep.subr.mxu0 %v4345_v42 }
 0x110   :  { %3684 = vmatprep.subr.mxu1 %v4352_v43  ;;  %3666 = vmatpush3.msra.mxu0 %v4345_v42 }
 0x111   :  { %3685 = vmatpush3.msra.mxu1 %v4352_v43  ;;  %3667 = vmatprep.subr.mxu0 %v4361_v45 }
 0x112   :  { %3686 = vmatprep.subr.mxu1 %v4368_v46  ;;  %3668 = vmatpush3.msra.mxu0 %v4361_v45 }
 0x113   :  { %3687 = vmatpush3.msra.mxu1 %v4368_v46  ;;  %3669 = vmatprep.subr.mxu0 %v4375_v47  ;;  %v3114_v46 = vld [vmem:[%s5195_s3] ss:$0 sm:$0xff] }
 0x114   :  { %3671 = vmatprep.mubr.msk.f32.mxu0 %vm399_vm1, %v373_v3  ;;  %3688 = vmatprep.subr.mxu1 %v4384_v49 }
 0x115   :  { %3670 = vmatpush3.msra.mxu0 %v4375_v47  ;;  %3689 = vmatpush3.msra.mxu1 %v4384_v49 }
 0x116   :  { %3672 = vmatmul.mubr.msk.f32.vlgmr.msra.gmra.mxu0 %vm399_vm1, %v3502_v2  ;;  %3691 = vmatmul.mubr.msk.f32.vlgmr.msra.gmra.mxu1 %vm399_vm1, %v4354_v44 }
 0x117   :  { %3693 = vmatprep.subr.mxu0 %v4396_v50  ;;  %3712 = vmatprep.subr.mxu1 %v4401_v51 }
 0x118   :  { %3694 = vmatpush3.msra.mxu0 %v4396_v50  ;;  %3709 = vmatprep.mubr.msk.f32.mxu0 %vm399_vm1, %v4277_v33 }
 0x119   :  { %3713 = vmatpush3.msra.mxu1 %v4401_v51  ;;  %3728 = vmatprep.mubr.msk.f32.mxu1 %vm399_vm1, %v373_v3  ;;  %v4723_v3 = vld [vmem:[%s5197_s5 + $0x18] sm:$0xff] }
 0x11a   :  { %3695 = vmatprep.subr.mxu0 %v4414_v52  ;;  %3714 = vmatprep.subr.mxu1 %v4419_v53 }
 0x11b   :  { %3696 = vmatpush3.msra.mxu0 %v4414_v52  ;;  %3715 = vmatpush3.msra.mxu1 %v4419_v53 }
 0x11c   :  { %3697 = vmatprep.subr.mxu0 %v4430_v54  ;;  %3716 = vmatprep.subr.mxu1 %v4435_v55 }
 0x11d   :  { %3698 = vmatpush3.msra.mxu0 %v4430_v54  ;;  %3717 = vmatpush3.msra.mxu1 %v4435_v55 }
 0x11e   :  { %3699 = vmatprep.subr.mxu0 %v4444_v56  ;;  %3718 = vmatprep.subr.mxu1 %v4449_v57 }
 0x11f   :  { %3700 = vmatpush3.msra.mxu0 %v4444_v56  ;;  %3719 = vmatpush3.msra.mxu1 %v4449_v57  ;;  %v1385_v56 = vld [vmem:[%s5196_s4] sm:$0xf]  ;;  %v3120_v57 = vld [vmem:[%s5196_s4 + $0x8] sm:$0xf] }
 0x120   :  { %3701 = vmatprep.subr.mxu0 %v4458_v58  ;;  %3720 = vmatprep.subr.mxu1 %v4463_v59 }
 0x121   :  { %3702 = vmatpush3.msra.mxu0 %v4458_v58  ;;  %3721 = vmatpush3.msra.mxu1 %v4463_v59  ;;  %v3117_v58 = vld [vmem:[%s5196_s4 + $0x4] sm:$0xf] }
 0x122   :  { %3703 = vmatprep.subr.mxu0 %v4472_v60  ;;  %3722 = vmatprep.subr.mxu1 %v4477_v61  ;;  %v4668_v59 = vld [vmem:[%s5197_s5 + $0xa0] sm:$0xff] }
 0x123   :  { %3704 = vmatpush3.msra.mxu0 %v4472_v60  ;;  %3723 = vmatpush3.msra.mxu1 %v4477_v61  ;;  %v3123_v60 = vld [vmem:[%s5196_s4 + $0xc] sm:$0xf]  ;;  %v4682_v61 = vld [vmem:[%s5197_s5 + $0x30] sm:$0xff] }
 0x124   :  { %3705 = vmatprep.subr.mxu0 %v4486_v62  ;;  %3724 = vmatprep.subr.mxu1 %v4491_v63 }
 0x125   :  { %3706 = vmatpush3.msra.mxu0 %v4486_v62  ;;  %3725 = vmatpush3.msra.mxu1 %v4491_v63  ;;  %v4688_v62 = vld [vmem:[%s5197_s5 + $0x98] sm:$0xff]  ;;  %v4696_v63 = vld [vmem:[%s5197_s5 + $0x28] sm:$0xff] }
 0x126   :  { %3707 = vmatprep.subr.mxu0 %v4500_v0  ;;  %3726 = vmatprep.subr.mxu1 %v4505_v1 }
 0x127   :  { %3708 = vmatpush3.msra.mxu0 %v4500_v0  ;;  %3727 = vmatpush3.msra.mxu1 %v4505_v1  ;;  %v4701_v0 = vld [vmem:[%s5197_s5 + $0x90] sm:$0xff]  ;;  %v4709_v1 = vld [vmem:[%s5197_s5 + $0x20] sm:$0xff] }
 0x128   :  { %3710 = vmatmul.mubr.msk.f32.vlgmr.msra.gmra.mxu0 %vm399_vm1, %v4273_v31  ;;  %3729 = vmatmul.mubr.msk.f32.vlgmr.msra.gmra.mxu1 %vm399_vm1, %v3502_v2  ;;  %v4715_v2 = vld [vmem:[%s5197_s5 + $0x88] sm:$0xff] }
 0x129   :  { %3731 = vmatprep.subr.mxu1 %v4035_v4  ;;  %3745 = vmatprep.subr.mxu0 %v4035_v4 }
 0x12a   :  { %3735 = vmatprep.mubr.msk.f32.mxu1 %vm4036_vm2, %v4035_v4  ;;  %3749 = vmatprep.mubr.msk.f32.mxu0 %vm4036_vm2, %v4035_v4 }
 0x18f   :  { %v3521_v5 = vpop.f32.mrf.mxu0  ;;  %v3540_v6 = vpop.f32.mrf.mxu1 }
 0x190   :  { %v559_v25 = vadd.f32 %v3540_v6, %v3521_v5  ;;  %v4729_v5 = vld [vmem:[%s5197_s5 + $0x80] sm:$0xff]  ;;  %v4737_v6 = vld [vmem:[%s5197_s5 + $0x10] sm:$0xff] }
 0x191   :  { %v472_v7 = vpop.f32.mrf.mxu0  ;;  %v553_v8 = vpop.f32.mrf.mxu1 }
 0x192   :  { %v554_v28 = vadd.f32 %v553_v8, %v472_v7  ;;  %v4746_v7 = vld [vmem:[%s5197_s5 + $0x8] sm:$0xff]  ;;  %v4756_v8 = vld [vmem:[%s5197_s5] sm:$0xff] }
 0x1a0   :  { %v3559_v9 = vpop.f32.mrf.mxu0  ;;  %v3578_v10 = vpop.f32.mrf.mxu1 }
 0x1a1   :  { %v653_v31 = vadd.f32 %v3559_v9, %v559_v25  ;;  %v4767_v9 = vld [vmem:[%s5197_s5 + $0x78] sm:$0xff] }
 0x1a2   :  { %v643_v11 = vpop.f32.mrf.mxu0  ;;  %v738_v12 = vpop.f32.mrf.mxu1 }
 0x1a3   :  { %v652_v37 = vadd.f32 %v643_v11, %v554_v28  ;;  %v4781_v11 = vld [vmem:[%s5197_s5 + $0xd8] sm:$0xff] }
 0x1b2   :  { %v3597_v13 = vpop.f32.mrf.mxu0  ;;  %v3616_v14 = vpop.f32.mrf.mxu1 }
 0x1b3   :  { %v819_v21 = vadd.f32 %v3597_v13, %v3578_v10  ;;  %v4774_v10 = vld [vmem:[%s5197_s5 + $0x70] sm:$0xff] }
 0x1b4   :  { %v813_v15 = vpop.f32.mrf.mxu0  ;;  %v897_v16 = vpop.f32.mrf.mxu1  ;;  %v4790_v13 = vld [vmem:[%s5197_s5 + $0xd0] sm:$0xff] }
 0x1b5   :  { %v814_v24 = vadd.f32 %v813_v15, %v738_v12  ;;  %v907_v26 = vadd.f32 %v3616_v14, %v819_v21  ;;  %v4822_v21 = vld [vmem:[%s5197_s5 + $0xc0] sm:$0xff] }
 0x1b7   :  { %v906_v32 = vadd.f32 %v897_v16, %v814_v24  ;;  %v909_v38 = vmax.f32 %v653_v31, %v907_v26  ;;  %v4801_v16 = vld [vmem:[%s5197_s5 + $0x110] sm:$0xff]  ;;  %v4836_v24 = vld [vmem:[%s5197_s5 + $0xb8] sm:$0xff]  ;;  %v4875_v31 = vld [vmem:[%s5197_s5 + $0xe8] sm:$0xff] }
 0x1b8   :  { %v4847_v26 = vld [vmem:[%s5197_s5 + $0xf8] sm:$0xff] }
 0x1b9   :  { %v908_v42 = vmax.f32 %v652_v37, %v906_v32  ;;  %v4882_v32 = vld [vmem:[%s5197_s5 + $0x148] sm:$0xff]  ;;  %v4922_v37 = vld [vmem:[%s5197_s5 + $0x60] sm:$0xff] }
 0x1c4   :  { %v3635_v17 = vpop.f32.mrf.mxu0  ;;  %v3654_v18 = vpop.f32.mrf.mxu1 }
 0x1c5   :  { %v1057_v27 = vadd.f32 %v3654_v18, %v3635_v17  ;;  %v4806_v17 = vld [vmem:[%s5197_s5 + $0xc8] sm:$0xff] }
 0x1c6   :  { %v976_v19 = vpop.f32.mrf.mxu0  ;;  %v1051_v20 = vpop.f32.mrf.mxu1 }
 0x1c7   :  { %v1052_v33 = vadd.f32 %v1051_v20, %v976_v19  ;;  %v4817_v20 = vld [vmem:[%s5197_s5 + $0x108] sm:$0xff] }
 0x1d6   :  { %v3673_v22 = vpop.f32.mrf.mxu0  ;;  %v3692_v23 = vpop.f32.mrf.mxu1 }
 0x1d7   :  { %v1142_v34 = vadd.f32 %v3673_v22, %v1057_v27  ;;  %v4852_v27 = vld [vmem:[%s5197_s5 + $0xb0] sm:$0xff] }
 0x1d8   :  { %v1132_v29 = vpop.f32.mrf.mxu0  ;;  %v1211_v30 = vpop.f32.mrf.mxu1 }
 0x1d9   :  { %v1141_v39 = vadd.f32 %v1132_v29, %v1052_v33  ;;  %v1144_v43 = vmax.f32 %v909_v38, %v1142_v34  ;;  %v4861_v29 = vld [vmem:[%s5197_s5 + $0xf0] sm:$0xff]  ;;  %v4890_v33 = vld [vmem:[%s5197_s5 + $0xe0] sm:$0xff] }
 0x1da   :  { %v4897_v34 = vld [vmem:[%s5197_s5 + $0x140] sm:$0xff]  ;;  %v4929_v38 = vld [vmem:[%s5197_s5 + $0x130] sm:$0xff] }
 0x1db   :  { %v1143_v48 = vmax.f32 %v908_v42, %v1141_v39  ;;  %v4936_v39 = vld [vmem:[%s5197_s5 + $0x58] sm:$0xff]  ;;  %v4957_v42 = vld [vmem:[%s5197_s5 + $0x120] sm:$0xff] }
 0x1e8   :  { %v3711_v35 = vpop.f32.mrf.mxu0  ;;  %v3730_v36 = vpop.f32.mrf.mxu1 }
 0x1e9   :  { %v1292_v40 = vadd.f32 %v3711_v35, %v3692_v23  ;;  %v4831_v23 = vld [vmem:[%s5197_s5 + $0x100] sm:$0xff]  ;;  %v4906_v35 = vld [vmem:[%s5197_s5 + $0x68] sm:$0xff] }
 0x1ea   :  { %v1286_v41 = vpop.f32.mrf.mxu0  ;;  %v1361_v47 = vpop.f32.mrf.mxu1 }
 0x1eb   :  { %v1371_v44 = vadd.f32 %v3730_v36, %v1292_v40  ;;  %v1287_v45 = vadd.f32 %v1286_v41, %v1211_v30  ;;  %v4866_v30 = vld [vmem:[%s5197_s5 + $0xa8] sm:$0xff]  ;;  %v4914_v36 = vld [vmem:[%s5197_s5 + $0x138] sm:$0xff]  ;;  %v4950_v41 = vld [vmem:[%s5197_s5 + $0x50] sm:$0xff] }
 0x1ec   :  { %v4943_v40 = vld [vmem:[%s5197_s5 + $0x128] sm:$0xff] }
 0x1ed   :  { %v1373_v49 = vmax.f32 %v1144_v43, %v1371_v44  ;;  %v1370_v50 = vadd.f32 %v1361_v47, %v1287_v45  ;;  %v4964_v43 = vld [vmem:[%s5197_s5 + $0x48] sm:$0xff]  ;;  %v4971_v44 = vld [vmem:[%s5197_s5 + $0x118] sm:$0xff]  ;;  %v4980_v45 = vld [vmem:[%s5197_s5 + $0x40] sm:$0xff] }
 0x1ef   :  { %v1382_v51 = vadd.f32 %v3114_v46, %v1373_v49  ;;  %v1372_v52 = vmax.f32 %v1143_v48, %v1370_v50 }
 0x1f1   :  { %v1384_v53 = vmax.f32 %v1382_v51, 0.0  ;;  %v1381_v54 = vadd.f32 %v3114_v46, %v1372_v52  ;;  %v4991_v46 = vld [vmem:[%s5197_s5 + $0x38] sm:$0xff] }
 0x1f3   :  { %v1383_v55 = vmax.f32 %v1381_v54, 0.0  ;;  %3732 = vmatpush3.msk.msra.mxu1 %vm1390_vm3, %v1384_v53  ;;  %3746 = vmatpush3.msk.msra.mxu0 %vm1390_vm3, %v1384_v53 }
 0x1f4   :  { %3733 = vmatprep.subr.mxu1 %v4035_v4  ;;  %3747 = vmatprep.subr.mxu0 %v4035_v4 }
 0x1f5   :  { %3734 = vmatpush3.msra.mxu1 %v1383_v55  ;;  %3748 = vmatpush3.msra.mxu0 %v1383_v55 }
 0x1f6   :  { %3736 = vmatmul.mubr.msk.f32.vlgmr.msra.gmra.mxu1 %vm1386_vm4, %v1385_v56  ;;  %3738 = vmatprep.subr.mxu1 %v4035_v4 }
 0x1f7   :  { %3739 = vmatpush3.msk.msra.mxu1 %vm1390_vm3, %v1384_v53  ;;  %3742 = vmatprep.mubr.msk.f32.mxu1 %vm4036_vm2, %v4035_v4 }
 0x1f8   :  { %3740 = vmatprep.subr.mxu1 %v4035_v4  ;;  %3750 = vmatmul.mubr.msk.f32.vlgmr.msra.gmra.mxu0 %vm1386_vm4, %v3120_v57 }
 0x1f9   :  { %3741 = vmatpush3.msra.mxu1 %v1383_v55  ;;  %3759 = vmatprep.subr.mxu0 %v4035_v4 }
 0x1fa   :  { %3743 = vmatmul.mubr.msk.f32.vlgmr.msra.gmra.mxu1 %vm1386_vm4, %v3117_v58  ;;  %3752 = vmatprep.subr.mxu1 %v4035_v4 }
 0x1fb   :  { %3753 = vmatpush3.msk.msra.mxu1 %vm1390_vm3, %v1384_v53  ;;  %3756 = vmatprep.mubr.msk.f32.mxu1 %vm4036_vm2, %v4035_v4 }
 0x1fc   :  { %3754 = vmatprep.subr.mxu1 %v4035_v4  ;;  %3760 = vmatpush3.msra.mxu0 %v4668_v59 }
 0x1fd   :  { %3755 = vmatpush3.msra.mxu1 %v1383_v55  ;;  %3761 = vmatprep.subr.mxu0 %v4035_v4 }
 0x1fe   :  { %3757 = vmatmul.mubr.msk.f32.vlgmr.msra.gmra.mxu1 %vm1386_vm4, %v3123_v60  ;;  %3776 = vmatprep.subr.mxu1 %v4035_v4 }
 0x1ff   :  { %3777 = vmatpush3.msra.mxu1 %v4682_v61  ;;  %3762 = vmatpush3.msra.mxu0 %v4688_v62 }
 0x200   :  { %3778 = vmatprep.subr.mxu1 %v4035_v4  ;;  %3763 = vmatprep.subr.mxu0 %v4035_v4 }
 0x201   :  { %3779 = vmatpush3.msra.mxu1 %v4696_v63  ;;  %3764 = vmatpush3.msra.mxu0 %v4701_v0 }
 0x202   :  { %3780 = vmatprep.subr.mxu1 %v4035_v4  ;;  %3765 = vmatprep.subr.mxu0 %v4035_v4 }
 0x203   :  { %3781 = vmatpush3.msra.mxu1 %v4709_v1  ;;  %3766 = vmatpush3.msra.mxu0 %v4715_v2 }
 0x204   :  { %3782 = vmatprep.subr.mxu1 %v4035_v4  ;;  %3767 = vmatprep.subr.mxu0 %v4035_v4 }
 0x205   :  { %3783 = vmatpush3.msra.mxu1 %v4723_v3  ;;  %3768 = vmatpush3.msra.mxu0 %v4729_v5 }
 0x206   :  { %3784 = vmatprep.subr.mxu1 %v4035_v4  ;;  %3769 = vmatprep.subr.mxu0 %v4035_v4 }
 0x207   :  { %3785 = vmatpush3.msra.mxu1 %v4737_v6  ;;  %3790 = vmatprep.mubr.msk.f32.mxu1 %vm4036_vm2, %v4035_v4 }
 0x208   :  { %3786 = vmatprep.subr.mxu1 %v4035_v4  ;;  %3773 = vmatprep.mubr.msk.f32.mxu0 %vm4036_vm2, %v4035_v4 }
 0x209   :  { %3787 = vmatpush3.msra.mxu1 %v4746_v7  ;;  %3770 = vmatpush3.msra.mxu0 %v4767_v9 }
 0x20a   :  { %3788 = vmatprep.subr.mxu1 %v4035_v4  ;;  %3771 = vmatprep.subr.mxu0 %v4035_v4 }
 0x20b   :  { %3789 = vmatpush3.msra.mxu1 %v4756_v8  ;;  %3772 = vmatpush3.msra.mxu0 %v4774_v10 }
 0x20c   :  { %3810 = vmatprep.subr.mxu1 %v4035_v4  ;;  %3793 = vmatprep.subr.mxu0 %v4035_v4 }
 0x2b6   :  { %v4783_v12 = vpop.f32.mrf.mxu1 }
 0x2b7   :  { %3791 = vmatmul.mubr.msk.f32.vlgmr.msra.gmra.mxu1 %vm1704_vm5, %v4783_v12 }
 0x2b8   :  { %3811 = vmatpush3.msra.mxu1 %v4781_v11  ;;  %v3737_v14 = vpop.f32.mrf.mxu1  ;;  %3824 = vmatprep.mubr.msk.f32.mxu1 %vm4036_vm2, %v4035_v4  ;;  %v4795_v15 = vpop.f32.mrf.mxu0 }
 0x2b9   :  { %3812 = vmatprep.subr.mxu1 %v4035_v4 }
 0x2ba   :  { %3813 = vmatpush3.msra.mxu1 %v4790_v13  ;;  %v4809_v18 = vpop.f32.mrf.mxu1  ;;  %v3751_v19 = vpop.f32.mrf.mxu0 }
 0x2bb   :  { %3814 = vmatprep.subr.mxu1 %v4035_v4  ;;  %3774 = vmatmul.mubr.msk.f32.vlgmr.msra.gmra.mxu0 %vm1704_vm5, %v4809_v18 }
 0x2bc   :  { %3794 = vmatpush3.msra.mxu0 %v4801_v16  ;;  %3815 = vmatpush3.msra.mxu1 %v4806_v17  ;;  %v3744_v22 = vpop.f32.mrf.mxu1 }
 0x2bd   :  { %3795 = vmatprep.subr.mxu0 %v4035_v4  ;;  %3816 = vmatprep.subr.mxu1 %v4035_v4  ;;  %v2605_v22 = vld [vmem:[%s5199_s7] sm:$0x3] }
 0x2be   :  { %3796 = vmatpush3.msra.mxu0 %v4817_v20  ;;  %3817 = vmatpush3.msra.mxu1 %v4822_v21  ;;  %v4840_v25 = vpop.f32.mrf.mxu1 }
 0x2bf   :  { %3797 = vmatprep.subr.mxu0 %v4035_v4  ;;  %3818 = vmatprep.subr.mxu1 %v4035_v4 }
 0x2c0   :  { %3798 = vmatpush3.msra.mxu0 %v4831_v23  ;;  %3819 = vmatpush3.msra.mxu1 %v4836_v24  ;;  %v3758_v28 = vpop.f32.mrf.mxu1 }
 0x2c1   :  { %3799 = vmatprep.subr.mxu0 %v4035_v4  ;;  %3820 = vmatprep.subr.mxu1 %v4035_v4  ;;  %v3180_v28 = vld [vmem:[%s5200_s8 + $0x28] sm:$0xff] }
 0x2c2   :  { %3800 = vmatpush3.msra.mxu0 %v4847_v26  ;;  %3821 = vmatpush3.msra.mxu1 %v4852_v27 }
 0x2c3   :  { %3801 = vmatprep.subr.mxu0 %v4035_v4  ;;  %3822 = vmatprep.subr.mxu1 %v4035_v4 }
 0x2c4   :  { %3802 = vmatpush3.msra.mxu0 %v4861_v29  ;;  %3823 = vmatpush3.msra.mxu1 %v4866_v30 }
 0x2c5   :  { %3803 = vmatprep.subr.mxu0 %v4035_v4  ;;  %3825 = vmatmul.mubr.msk.f32.vlgmr.msra.gmra.mxu1 %vm1704_vm5, %v4809_v18 }
 0x2c6   :  { %3844 = vmatprep.subr.mxu1 %v4035_v4  ;;  %3804 = vmatpush3.msra.mxu0 %v4875_v31 }
 0x2c7   :  { %3845 = vmatpush3.msra.mxu1 %v4882_v32  ;;  %3805 = vmatprep.subr.mxu0 %v4035_v4 }
 0x2c8   :  { %3846 = vmatprep.subr.mxu1 %v4035_v4  ;;  %3806 = vmatpush3.msra.mxu0 %v4890_v33 }
 0x2c9   :  { %3807 = vmatprep.mubr.msk.f32.mxu0 %vm4036_vm2, %v4035_v4  ;;  %3847 = vmatpush3.msra.mxu1 %v4897_v34 }
 0x2ca   :  { %3808 = vmatmul.mubr.msk.f32.vlgmr.msra.gmra.mxu0 %vm1704_vm5, %v4795_v15  ;;  %3827 = vmatprep.subr.mxu0 %v4035_v4 }
 0x2cb   :  { %3848 = vmatprep.subr.mxu1 %v4035_v4  ;;  %3828 = vmatpush3.msra.mxu0 %v4906_v35 }
 0x2cc   :  { %3849 = vmatpush3.msra.mxu1 %v4914_v36  ;;  %3829 = vmatprep.subr.mxu0 %v4035_v4 }
 0x2cd   :  { %3850 = vmatprep.subr.mxu1 %v4035_v4  ;;  %3830 = vmatpush3.msra.mxu0 %v4922_v37 }
 0x2ce   :  { %3851 = vmatpush3.msra.mxu1 %v4929_v38  ;;  %3831 = vmatprep.subr.mxu0 %v4035_v4 }
 0x2cf   :  { %3852 = vmatprep.subr.mxu1 %v4035_v4  ;;  %3832 = vmatpush3.msra.mxu0 %v4936_v39 }
 0x2d0   :  { %3853 = vmatpush3.msra.mxu1 %v4943_v40  ;;  %3833 = vmatprep.subr.mxu0 %v4035_v4 }
 0x2d1   :  { %3854 = vmatprep.subr.mxu1 %v4035_v4  ;;  %3834 = vmatpush3.msra.mxu0 %v4950_v41 }
 0x2d2   :  { %3855 = vmatpush3.msra.mxu1 %v4957_v42  ;;  %3835 = vmatprep.subr.mxu0 %v4035_v4 }
 0x2d3   :  { %3856 = vmatprep.subr.mxu1 %v4035_v4  ;;  %3836 = vmatpush3.msra.mxu0 %v4964_v43 }
 0x2d4   :  { %3857 = vmatpush3.msra.mxu1 %v4971_v44  ;;  %3858 = vmatprep.mubr.msk.f32.mxu1 %vm4036_vm2, %v4035_v4 }
 0x2d5   :  { %3837 = vmatprep.subr.mxu0 %v4035_v4  ;;  %3859 = vmatmul.mubr.msk.f32.vlgmr.msra.gmra.mxu1 %vm1704_vm5, %v4795_v15 }
 0x2d6   :  { %3878 = vmatprep.subr.mxu1 %v4035_v4  ;;  %3838 = vmatpush3.msra.mxu0 %v4980_v45 }
 0x2d7   :  { %3879 = vmatpush3.msra.mxu1 %v4682_v61  ;;  %3839 = vmatprep.subr.mxu0 %v4035_v4 }
 0x2d8   :  { %3880 = vmatprep.subr.mxu1 %v4035_v4  ;;  %3840 = vmatpush3.msra.mxu0 %v4991_v46 }
 0x2d9   :  { %3841 = vmatprep.mubr.msk.f32.mxu0 %vm4036_vm2, %v4035_v4  ;;  %3881 = vmatpush3.msra.mxu1 %v4696_v63 }
 0x2da   :  { %3842 = vmatmul.mubr.msk.f32.vlgmr.msra.gmra.mxu0 %vm1704_vm5, %v4783_v12  ;;  %3861 = vmatprep.subr.mxu0 %v4035_v4 }
 0x2db   :  { %3882 = vmatprep.subr.mxu1 %v4035_v4  ;;  %3862 = vmatpush3.msra.mxu0 %v4668_v59 }
 0x2dc   :  { %3883 = vmatpush3.msra.mxu1 %v4709_v1  ;;  %3863 = vmatprep.subr.mxu0 %v4035_v4 }
 0x2dd   :  { %3884 = vmatprep.subr.mxu1 %v4035_v4  ;;  %3864 = vmatpush3.msra.mxu0 %v4688_v62 }
 0x2de   :  { %3885 = vmatpush3.msra.mxu1 %v4723_v3  ;;  %3865 = vmatprep.subr.mxu0 %v4035_v4 }
 0x2df   :  { %3886 = vmatprep.subr.mxu1 %v4035_v4  ;;  %3866 = vmatpush3.msra.mxu0 %v4701_v0 }
 0x2e0   :  { %3887 = vmatpush3.msra.mxu1 %v4737_v6  ;;  %3867 = vmatprep.subr.mxu0 %v4035_v4 }
 0x2e1   :  { %3888 = vmatprep.subr.mxu1 %v4035_v4  ;;  %3868 = vmatpush3.msra.mxu0 %v4715_v2 }
 0x2e2   :  { %3889 = vmatpush3.msra.mxu1 %v4746_v7  ;;  %3869 = vmatprep.subr.mxu0 %v4035_v4 }
 0x2e3   :  { %3890 = vmatprep.subr.mxu1 %v4035_v4  ;;  %3870 = vmatpush3.msra.mxu0 %v4729_v5 }
 0x2e4   :  { %3891 = vmatpush3.msra.mxu1 %v4756_v8  ;;  %3892 = vmatprep.mubr.msk.f32.mxu1 %vm4036_vm2, %v4035_v4 }
 0x2e5   :  { %3871 = vmatprep.subr.mxu0 %v4035_v4  ;;  %3893 = vmatmul.mubr.msk.f32.vlgmr.msra.gmra.mxu1 %vm1704_vm5, %v4809_v18 }
 0x2e6   :  { %3912 = vmatprep.subr.mxu1 %v4035_v4  ;;  %3872 = vmatpush3.msra.mxu0 %v4767_v9 }
 0x2e7   :  { %3913 = vmatpush3.msra.mxu1 %v4781_v11  ;;  %3873 = vmatprep.subr.mxu0 %v4035_v4 }
 0x2e8   :  { %3914 = vmatprep.subr.mxu1 %v4035_v4  ;;  %3874 = vmatpush3.msra.mxu0 %v4774_v10 }
 0x2e9   :  { %3875 = vmatprep.mubr.msk.f32.mxu0 %vm4036_vm2, %v4035_v4  ;;  %3915 = vmatpush3.msra.mxu1 %v4790_v13 }
 0x2ea   :  { %3876 = vmatmul.mubr.msk.f32.vlgmr.msra.gmra.mxu0 %vm1704_vm5, %v4795_v15  ;;  %3895 = vmatprep.subr.mxu0 %v4035_v4 }
 0x2eb   :  { %3916 = vmatprep.subr.mxu1 %v4035_v4  ;;  %3896 = vmatpush3.msra.mxu0 %v4801_v16 }
 0x2ec   :  { %3917 = vmatpush3.msra.mxu1 %v4806_v17  ;;  %3897 = vmatprep.subr.mxu0 %v4035_v4 }
 0x2ed   :  { %3918 = vmatprep.subr.mxu1 %v4035_v4  ;;  %3898 = vmatpush3.msra.mxu0 %v4817_v20 }
 0x2ee   :  { %3919 = vmatpush3.msra.mxu1 %v4822_v21  ;;  %3899 = vmatprep.subr.mxu0 %v4035_v4 }
 0x2ef   :  { %3920 = vmatprep.subr.mxu1 %v4035_v4  ;;  %3900 = vmatpush3.msra.mxu0 %v4831_v23  ;;  %v3176_v23 = vld [vmem:[%s5199_s7 + $0x2] sm:$0x3] }
 0x2f0   :  { %3921 = vmatpush3.msra.mxu1 %v4836_v24  ;;  %3901 = vmatprep.subr.mxu0 %v4035_v4  ;;  %v3182_v24 = vld [vmem:[%s5200_s8 + $0x38] sm:$0xff] }
 0x2f1   :  { %3922 = vmatprep.subr.mxu1 %v4035_v4  ;;  %3902 = vmatpush3.msra.mxu0 %v4847_v26  ;;  %v3181_v26 = vld [vmem:[%s5200_s8 + $0x30] sm:$0xff] }
 0x2f2   :  { %3923 = vmatpush3.msra.mxu1 %v4852_v27  ;;  %3903 = vmatprep.subr.mxu0 %v4035_v4  ;;  %v2686_v27 = vld [vmem:[%s5200_s8 + $0x10] sm:$0xff] }
 0x2f3   :  { %3924 = vmatprep.subr.mxu1 %v4035_v4  ;;  %3904 = vmatpush3.msra.mxu0 %v4861_v29  ;;  %v2685_v29 = vld [vmem:[%s5200_s8 + $0x8] sm:$0xff] }
 0x2f4   :  { %3925 = vmatpush3.msra.mxu1 %v4866_v30  ;;  %3926 = vmatprep.mubr.msk.f32.mxu1 %vm4036_vm2, %v4035_v4  ;;  %v3179_v30 = vld [vmem:[%s5200_s8 + $0x20] sm:$0xff] }
 0x2f5   :  { %3905 = vmatprep.subr.mxu0 %v4035_v4  ;;  %3927 = vmatmul.mubr.msk.f32.vlgmr.msra.gmra.mxu1 %vm1704_vm5, %v4795_v15 }
 0x2f6   :  { %3946 = vmatprep.subr.mxu1 %v4035_v4  ;;  %3906 = vmatpush3.msra.mxu0 %v4875_v31  ;;  %v2684_v31 = vld [vmem:[%s5200_s8] sm:$0xff] }
 0x2f7   :  { %3947 = vmatpush3.msra.mxu1 %v4882_v32  ;;  %3907 = vmatprep.subr.mxu0 %v4035_v4 }
 0x2f8   :  { %3948 = vmatprep.subr.mxu1 %v4035_v4  ;;  %3908 = vmatpush3.msra.mxu0 %v4890_v33 }
 0x2f9   :  { %3909 = vmatprep.mubr.msk.f32.mxu0 %vm4036_vm2, %v4035_v4  ;;  %3949 = vmatpush3.msra.mxu1 %v4897_v34 }
 0x2fa   :  { %3910 = vmatmul.mubr.msk.f32.vlgmr.msra.gmra.mxu0 %vm1704_vm5, %v4840_v25  ;;  %3929 = vmatprep.subr.mxu0 %v4035_v4 }
 0x2fb   :  { %3950 = vmatprep.subr.mxu1 %v4035_v4  ;;  %3930 = vmatpush3.msra.mxu0 %v4906_v35 }
 0x2fc   :  { %3951 = vmatpush3.msra.mxu1 %v4914_v36  ;;  %3931 = vmatprep.subr.mxu0 %v4035_v4  ;;  %v2926_v36 = vld [vmem:[%s5202_s10 + $0x18] sm:$0xff] }
 0x2fd   :  { %3952 = vmatprep.subr.mxu1 %v4035_v4  ;;  %3932 = vmatpush3.msra.mxu0 %v4922_v37  ;;  %v2925_v37 = vld [vmem:[%s5202_s10 + $0x10] sm:$0xff] }
 0x2fe   :  { %3953 = vmatpush3.msra.mxu1 %v4929_v38  ;;  %3933 = vmatprep.subr.mxu0 %v4035_v4  ;;  %v2924_v38 = vld [vmem:[%s5202_s10 + $0x8] sm:$0xff] }
 0x2ff   :  { %3954 = vmatprep.subr.mxu1 %v4035_v4  ;;  %3934 = vmatpush3.msra.mxu0 %v4936_v39  ;;  %v2923_v39 = vld [vmem:[%s5202_s10] sm:$0xff] }
 0x300   :  { %3955 = vmatpush3.msra.mxu1 %v4943_v40  ;;  %3935 = vmatprep.subr.mxu0 %v4035_v4 }
 0x301   :  { %3956 = vmatprep.subr.mxu1 %v4035_v4  ;;  %3936 = vmatpush3.msra.mxu0 %v4950_v41 }
 0x302   :  { %3957 = vmatpush3.msra.mxu1 %v4957_v42  ;;  %3937 = vmatprep.subr.mxu0 %v4035_v4  ;;  %v3185_v42 = vld [vmem:[%s5201_s9] ss:$0 sm:$0xff]  ;;  %s4037_s9 = smov [#allocation2]  }
 0x303   :  { %3958 = vmatprep.subr.mxu1 %v4035_v4  ;;  %3938 = vmatpush3.msra.mxu0 %v4964_v43  ;;  %s3028_s10 = sshll.u32 %s4037_s9, 4  ;;  %s3029_s10 = int_to_ptr.vmem [resolvable:$true] %s3028_s10 }
 0x304   :  { %3959 = vmatpush3.msra.mxu1 %v4971_v44  ;;  %3960 = vmatprep.mubr.msk.f32.mxu1 %vm4036_vm2, %v4035_v4  ;;  %p4018_p1 = scmp.lt.s32.totalorder %s3029_s10, %s3029_s10 }
 0x305   :  { %3939 = vmatprep.subr.mxu0 %v4035_v4  ;;  %3961 = vmatmul.mubr.msk.f32.vlgmr.msra.gmra.mxu1 %vm1704_vm5, %v4840_v25  ;;  %v2687_v25 = vld [vmem:[%s5200_s8 + $0x18] sm:$0xff] }
 0x306   :  { %3940 = vmatpush3.msra.mxu0 %v4980_v45  ;;  %3943 = vmatprep.mubr.msk.f32.mxu0 %vm4036_vm2, %v4035_v4 }
 0x307   :  { %3941 = vmatprep.subr.mxu0 %v4035_v4  ;;  %3968 = vmatprep.subr.mxu1 %v4035_v4 }
 0x308   :  { %3942 = vmatpush3.msra.mxu0 %v4991_v46  ;;  %3970 = vmatprep.mubr.msk.f32.mxu1 %vm4036_vm2, %v4035_v4 }
 0x309   :  { %3944 = vmatmul.mubr.msk.f32.vlgmr.msra.gmra.mxu0 %vm1704_vm5, %v4809_v18  ;;  %3963 = vmatprep.subr.mxu0 %v4035_v4  ;;  %v3173_v18 = vld [vmem:[%s5198_s6] ss:$0 sm:$0xff] }
 0x30a   :  { %3965 = vmatprep.mubr.msk.f32.mxu0 %vm4036_vm2, %v4035_v4 }
 0x377   :  { %v1847_v47 = vpop.f32.mrf.mxu1 }
 0x379   :  { %v3792_v48 = vpop.f32.mrf.mxu1 }
 0x37b   :  { %v1774_v49 = vpop.f32.mrf.mxu0 }
 0x37c   :  { %v1848_v50 = vadd.f32 %v1847_v47, %v1774_v49 }
 0x37d   :  { %v3775_v51 = vpop.f32.mrf.mxu0 }
 0x385   :  { %v2015_v52 = vpop.f32.mrf.mxu1 }
 0x387   :  { %v3826_v53 = vpop.f32.mrf.mxu1 }
 0x38a   :  { %v1928_v54 = vpop.f32.mrf.mxu0 }
 0x38b   :  { %v1932_v61 = vadd.f32 %v1928_v54, %v1848_v50 }
 0x38c   :  { %v3809_v55 = vpop.f32.mrf.mxu0 }
 0x395   :  { %v2163_v56 = vpop.f32.mrf.mxu1 }
 0x397   :  { %v3860_v57 = vpop.f32.mrf.mxu1 }
 0x39a   :  { %v2085_v58 = vpop.f32.mrf.mxu0 }
 0x39b   :  { %v2086_v59 = vadd.f32 %v2085_v58, %v2015_v52 }
 0x39c   :  { %v3843_v60 = vpop.f32.mrf.mxu0 }
 0x39d   :  { %v2167_v62 = vadd.f32 %v2163_v56, %v2086_v59 }
 0x39f   :  { %v2168_v63 = vmax.f32 %v1932_v61, %v2167_v62 }
 0x3a5   :  { %v2305_v0 = vpop.f32.mrf.mxu1 }
 0x3a7   :  { %v3894_v1 = vpop.f32.mrf.mxu1 }
 0x3aa   :  { %v2235_v2 = vpop.f32.mrf.mxu0 }
 0x3ab   :  { %v2306_v10 = vadd.f32 %v2305_v0, %v2235_v2 }
 0x3ac   :  { %v3877_v3 = vpop.f32.mrf.mxu0 }
 0x3b5   :  { %v2450_v5 = vpop.f32.mrf.mxu1 }
 0x3b7   :  { %v3928_v6 = vpop.f32.mrf.mxu1 }
 0x3ba   :  { %v2378_v7 = vpop.f32.mrf.mxu0 }
 0x3bb   :  { %v2382_v12 = vadd.f32 %v2378_v7, %v2306_v10 }
 0x3bc   :  { %v3911_v8 = vpop.f32.mrf.mxu0 }
 0x3bd   :  { %v2383_v16 = vmax.f32 %v2168_v63, %v2382_v12 }
 0x3c5   :  { %v2590_v9 = vpop.f32.mrf.mxu1 }
 0x3c7   :  { %v3962_v11 = vpop.f32.mrf.mxu1 }
 0x3c9   :  { %v2520_v13 = vpop.f32.mrf.mxu0 }
 0x3ca   :  { %v2521_v14 = vadd.f32 %v2520_v13, %v2450_v5 }
 0x3cb   :  { %v3945_v15 = vpop.f32.mrf.mxu0 }
 0x3cc   :  { %v2594_v17 = vadd.f32 %v2590_v9, %v2521_v14 }
 0x3ce   :  { %v2595_v19 = vmax.f32 %v2383_v16, %v2594_v17 }
 0x3d0   :  { %v2603_v20 = vadd.f32 %v3173_v18, %v2595_v19 }
 0x3d2   :  { %v2604_v21 = vmax.f32 %v2603_v20, 0.0 }
 0x3d4   :  { %3964 = vmatpush3.msk.msra.mxu0 %vm2610_vm6, %v2604_v21  ;;  %3969 = vmatpush3.msk.msra.mxu1 %vm2610_vm6, %v2604_v21 }
 0x3d5   :  { %3966 = vmatmul.mubr.msk.f32.vlgmr.msra.gmra.mxu0 %vm2606_vm7, %v2605_v22  ;;  %3971 = vmatmul.mubr.msk.f32.vlgmr.msra.gmra.mxu1 %vm2606_vm7, %v3176_v23 }
 0x3d6   :  { %3973 = vmatprep.subr.mxu0 %v4035_v4  ;;  %3984 = vmatprep.subr.mxu1 %v4035_v4 }
 0x3d7   :  { %3974 = vmatpush3.msra.mxu0 %v3182_v24  ;;  %3985 = vmatpush3.msra.mxu1 %v2687_v25 }
 0x3d8   :  { %3975 = vmatprep.subr.mxu0 %v4035_v4  ;;  %3986 = vmatprep.subr.mxu1 %v4035_v4 }
 0x3d9   :  { %3976 = vmatpush3.msra.mxu0 %v3181_v26  ;;  %3987 = vmatpush3.msra.mxu1 %v2686_v27 }
 0x3da   :  { %3977 = vmatprep.subr.mxu0 %v4035_v4  ;;  %3988 = vmatprep.subr.mxu1 %v4035_v4 }
 0x3db   :  { %3978 = vmatpush3.msra.mxu0 %v3180_v28  ;;  %3989 = vmatpush3.msra.mxu1 %v2685_v29 }
 0x3dc   :  { %3979 = vmatprep.subr.mxu0 %v4035_v4  ;;  %3990 = vmatprep.subr.mxu1 %v4035_v4 }
 0x3dd   :  { %3981 = vmatprep.mubr.msk.f32.mxu0 %vm4036_vm2, %v4035_v4  ;;  %3992 = vmatprep.mubr.msk.f32.mxu1 %vm4036_vm2, %v4035_v4 }
 0x3de   :  { %3980 = vmatpush3.msra.mxu0 %v3179_v30  ;;  %3991 = vmatpush3.msra.mxu1 %v2684_v31 }
 0x3df   :  { %3995 = vmatprep.subr.mxu0 %v4035_v4 }
 0x495   :  { %v2680_v32 = vpop.f32.mrf.mxu0  ;;  %v2759_v33 = vpop.f32.mrf.mxu1 }
 0x496   :  { %3982 = vmatmul.mubr.msk.f32.vlgmr.msra.gmra.mxu0 %vm48_vm0, %v2759_v33  ;;  %3993 = vmatmul.mubr.msk.f32.vlgmr.msra.gmra.mxu1 %vm48_vm0, %v2680_v32 }
 0x497   :  { %v3967_v34 = vpop.f32.mrf.mxu0  ;;  %v3972_v35 = vpop.f32.mrf.mxu1  ;;  %4003 = vmatprep.mubr.msk.f32.mxu0 %vm4036_vm2, %v4035_v4  ;;  %3996 = vmatpush3.msra.mxu0 %v2926_v36 }
 0x498   :  { %3997 = vmatprep.subr.mxu0 %v4035_v4 }
 0x499   :  { %3998 = vmatpush3.msra.mxu0 %v2925_v37 }
 0x49a   :  { %3999 = vmatprep.subr.mxu0 %v4035_v4 }
 0x49b   :  { %4000 = vmatpush3.msra.mxu0 %v2924_v38 }
 0x49c   :  { %4001 = vmatprep.subr.mxu0 %v4035_v4  ;;  %v3186_v4 = vld [vmem:[%s5203_s11] ss:$0 sm:$0xff]  ;;  %s4013_s11 = scalar_lea.vmem %s3029_s10, 32 }
 0x49d   :  { %4002 = vmatpush3.msra.mxu0 %v2923_v39  ;;  %p4014_p0 = scmp.ne.s32.totalorder %s3029_s10, %s4013_s11  ;;  %p4019_p2 = scmp.lt.s32.totalorder %s4013_s11, %s4013_s11 }
 0x49f   :  { %p4020_p3 = por %p4019_p2, %p4018_p1 }
 0x4a1   :  { %p4021_p4 = pnand %p4020_p3, %p4014_p0 }
 0x556   :  { %v2837_v40 = vpop.f32.mrf.mxu0  ;;  %v2910_v41 = vpop.f32.mrf.mxu1 }
 0x557   :  { %v2911_v43 = vadd.f32 %v2910_v41, %v2837_v40 }
 0x558   :  { %v3983_v44 = vpop.f32.mrf.mxu0  ;;  %v3994_v45 = vpop.f32.mrf.mxu1 }
 0x559   :  { %v2921_v46 = vadd.f32 %v3185_v42, %v2911_v43 }
 0x55b   :  { %v2922_v47 = vmax.f32 %v2921_v46, 0.0 }
 0x55d   :  { %4004 = vmatmul.mubr.msk.f32.vlgmr.msra.gmra.mxu0 %vm48_vm0, %v2922_v47 }
 0x61d   :  { %v3003_v48 = vpop.f32.mrf.mxu0 }
 0x61e   :  { %v3004_v49 = vadd.f32 %v3186_v4, %v3003_v48 }
 0x61f   :  { %v4005_v50 = vpop.f32.mrf.mxu0 }
 0x620   :  { %v3008_v51 = vsel %vm3007_vm8, %v3004_v49, -inf }
 0x621   :  { %3009 = vmax.xlane.f32.xlu0 %v3008_v51 }
 0x6aa   :  { %v3010_v52 = vpop.xlane.xlu0 %3009 }
 0x6ab   :  { %v3011_v53 = vsub.f32 %v3004_v49, %v3010_v52 }
 0x6ad   :  { %v3012_v54 = vmul.f32 1.442695, %v3011_v53 }
 0x6af   :  { %4009 = vpow2.f32 %v3012_v54 }
 0x6bc   :  { %v4010_v55 = vpop.eup %4009 }
 0x6bd   :  { %v3014_v56 = vsel %vm3007_vm8, %v4010_v55, 0.0 }
 0x6be   :  { %3015 = vadd.xlane.f32.xlu0 %v3014_v56 }
 0x747   :  { %v3016_v57 = vpop.xlane.xlu0 %3015 }
 0x748   :  { %4011 = vlog2.f32 %v3016_v57 }
 0x755   :  { %v4012_v58 = vpop.eup %4011 }
 0x756   :  { %v3018_v59 = vmul.f32 0.6931472, %v4012_v58 }
 0x758   :  { %v3019_v60 = vadd.f32 %v3018_v59, %v3010_v52 }
 0x75a   :  { %v3020_v61 = vsub.f32 %v3004_v49, %v3019_v60 }
 0x75c   :  { %3021 = vst.msk [vmem:[#allocation2] sm:$0x3] %vm3007_vm8, %v3020_v61 }
 0x75d   :  { %4024 = shalt.err (!%p4021_p4)
}
 0x75e   :  { %3031 = dma.vmem_to_hbm [thread:$0]  %s3029_s10, 32, %s5204_s12, [#allocation3]  }
 0x75f   :  { %4033 = dma.done.wait [#allocation3], 32  }
 0x760   :  { %4034 = vsyncadd [#allocation3], 4294967264 }
 0x761   :  { %3035 = vsyncpa [#allocation3], 1 }

</bundles_post_ra>
